<compile_context>
chip_gen: v6e
topology: v6e:2x2x1
jax: 0.10.0
libtpu: 0.0.40
codegen_flags: <defaults>
</compile_context>

<pallas_src>
import jax
import jax.numpy as jnp
from jax.experimental import pallas as pl
from jax.experimental.pallas import tpu as pltpu


def _round_up(x, m):
    return ((x + m - 1) // m) * m


def _vmem_capacity_bytes():
    """Trace-time VMEM capacity; conservative (v7x, 64 MiB) fallback."""
    try:
        return int(pltpu.get_tpu_info().vmem_capacity_bytes)
    except Exception:
        return 64 << 20


def _sigmoid(x):
    # exp and the approximate reciprocal both issue on the EUP slot, keeping
    # the VALU free; the kernel is memory-bound so this is free filler.
    return pl.reciprocal(1.0 + jnp.exp(-x), approx=True)


def sae_kernel(x_ref,
               w1_ref, b1_ref,
               w2_ref, b2_ref,
               w3_ref, b3_ref,
               w4_ref, b4_ref,
               o_ref):
    # Whole 4-layer MLP fused in one body.  x arrives as f32 straight from
    # HBM and is packed to bf16 in-kernel; MXU matmuls are bf16 x bf16 with
    # f32 accumulation; bias add + sigmoid in f32; output written as f32.
    x = x_ref[...].astype(jnp.bfloat16)                          # (tb, M)
    h1 = _sigmoid(jnp.dot(x, w1_ref[...],
                          preferred_element_type=jnp.float32) + b1_ref[...])
    h1 = h1.astype(jnp.bfloat16)
    h2 = _sigmoid(jnp.dot(h1, w2_ref[...],
                          preferred_element_type=jnp.float32) + b2_ref[...])
    h2 = h2.astype(jnp.bfloat16)
    h3 = _sigmoid(jnp.dot(h2, w3_ref[...],
                          preferred_element_type=jnp.float32) + b3_ref[...])
    h3 = h3.astype(jnp.bfloat16)
    out = jnp.dot(h3, w4_ref[...],
                  preferred_element_type=jnp.float32) + b4_ref[...]
    o_ref[...] = out.astype(o_ref.dtype)


def _pick_tb(B, M, vmem_cap):
    # Bytes per batch row held in VMEM by the streamed operands:
    # x (f32) + out (f32), each double-buffered by the pipeline.
    per_row = 2 * 2 * M * 4
    small_vmem = vmem_cap <= (64 << 20)          # v7x
    budget = (16 << 20) if small_vmem else (32 << 20)
    cap = max(16, (budget // per_row) // 16 * 16)
    tb = min(1024, cap)
    tb = min(tb, _round_up(B, 16))
    # v7x: two TensorCores shard the "parallel" batch axis, so prefer >=2
    # grid steps — but never shrink a tile below 256 rows to get them.
    if small_vmem and B > 512 and pl.cdiv(B, tb) < 2:
        tb = max(256, _round_up(pl.cdiv(B, 2), 16))
    return max(16, tb)


def sae_forward(x, params, *, tb=None):
    """x: (B, nb_movies) float32.  params: W1..W4 stored (in, out), b1..b4.

    Returns (B, nb_movies) float32 (same as the PyTorch forward)."""
    B, M = x.shape
    f32 = jnp.float32
    bf16 = jnp.bfloat16

    vmem_cap = _vmem_capacity_bytes()
    if tb is None:
        tb = _pick_tb(B, M, vmem_cap)
    tb = max(16, _round_up(min(tb, _round_up(B, 16)), 16))

    # Weights are tiny and resident: cast once to bf16 in the wrapper.
    # Biases stay f32 (added to the f32 accumulators).
    w1 = params["W1"].astype(bf16)               # (M, 20)
    w2 = params["W2"].astype(bf16)               # (20, 10)
    w3 = params["W3"].astype(bf16)               # (10, 20)
    w4 = params["W4"].astype(bf16)               # (20, M)
    b1 = params["b1"].reshape(1, -1).astype(f32)
    b2 = params["b2"].reshape(1, -1).astype(f32)
    b3 = params["b3"].reshape(1, -1).astype(f32)
    b4 = params["b4"].reshape(1, -1).astype(f32)

    # VMEM budget: double-buffered x/out f32 tiles + resident params + f32
    # temporaries headroom; capped at 3/4 of the chip's physical VMEM.
    stream = 2 * 2 * tb * M * 4                        # x + out, double-buffered
    resident_bytes = 2 * (2 * (2 * M * 20 + 20 * 10 + 10 * 20)   # bf16 weights
                          + 4 * (M + 64))                        # f32 biases
    est = stream + stream // 2 + resident_bytes + (4 << 20)
    vmem_limit = int(min(max(est, 32 << 20), (vmem_cap // 4) * 3))

    def resident(arr):
        nd = arr.ndim
        return pl.BlockSpec(arr.shape, lambda i, _nd=nd: (0,) * _nd)

    grid = (pl.cdiv(B, tb),)
    out = pl.pallas_call(
        sae_kernel,
        out_shape=jax.ShapeDtypeStruct((B, M), f32),
        grid_spec=pltpu.PrefetchScalarGridSpec(
            num_scalar_prefetch=0,
            grid=grid,
            in_specs=[
                pl.BlockSpec((tb, M), lambda i: (i, 0)),   # x tile (streamed f32)
                resident(w1), resident(b1),
                resident(w2), resident(b2),
                resident(w3), resident(b3),
                resident(w4), resident(b4),
            ],
            out_specs=pl.BlockSpec((tb, M), lambda i: (i, 0)),
        ),
        compiler_params=pltpu.CompilerParams(
            dimension_semantics=("parallel",),
            vmem_limit_bytes=vmem_limit,
        ),
    )(x.astype(f32), w1, b1, w2, b2, w3, b3, w4, b4)

    return out


def init_params(key, nb_movies):
    """Deterministic synthetic init; shapes match the PyTorch module, stored
    transposed as (in, out) so the kernel computes x @ W + b (== torch's
    x @ weight.T + bias)."""
    dims = [(nb_movies, 20), (20, 10), (10, 20), (20, nb_movies)]
    params = {}
    keys = jax.random.split(key, 2 * len(dims))
    for idx, (fan_in, fan_out) in enumerate(dims):
        bound = 1.0 / jnp.sqrt(jnp.float32(fan_in))
        params[f"W{idx + 1}"] = jax.random.uniform(
            keys[2 * idx], (fan_in, fan_out), jnp.float32, -bound, bound)
        params[f"b{idx + 1}"] = jax.random.uniform(
            keys[2 * idx + 1], (fan_out,), jnp.float32, -bound, bound)
    return params


def sae_reference(x, p, *, matmul_dtype=jnp.bfloat16):
    """Pure-JAX reference matching the PyTorch forward.  With
    matmul_dtype=bf16 the matmul inputs are quantized the same way the kernel
    feeds the MXU (accumulation still f32), isolating kernel correctness from
    bf16 rounding."""
    def cast(a):
        return a.astype(matmul_dtype).astype(jnp.float32)
    h = jax.nn.sigmoid(cast(x) @ cast(p["W1"]) + p["b1"])
    h = jax.nn.sigmoid(cast(h) @ cast(p["W2"]) + p["b2"])
    h = jax.nn.sigmoid(cast(h) @ cast(p["W3"]) + p["b3"])
    return cast(h) @ cast(p["W4"]) + p["b4"]


if __name__ == "__main__":
    nb_movies = 300    # deliberately NOT a multiple of 128 -> ragged lane dim
    batch = 256

    key = jax.random.PRNGKey(0)
    k_params, k_x = jax.random.split(key)
    params = init_params(k_params, nb_movies)
    x = jax.random.uniform(k_x, (batch, nb_movies), jnp.float32)

    out = sae_forward(x, params)
    out = jax.block_until_ready(out)
    assert out.shape == (batch, nb_movies)
    assert out.dtype == jnp.float32

    # Compare against a reference with matching bf16 MXU-input quantization.
    ref = sae_reference(x, params, matmul_dtype=jnp.bfloat16)
    err = float(jnp.max(jnp.abs(out - ref)))
    assert err < 3e-2, f"max abs error {err} vs reference"

    print("KERNEL_OK")
</pallas_src>

<mosaic_0001>
module attributes {stable_mosaic.version = 11 : i64} {
  func.func @sae_kernel(%arg0: i32, %arg1: memref<256x300xf32, #tpu.memory_space<vmem>>, %arg2: memref<300x20xbf16, #tpu.memory_space<vmem>>, %arg3: memref<1x20xf32, #tpu.memory_space<vmem>>, %arg4: memref<20x10xbf16, #tpu.memory_space<vmem>>, %arg5: memref<1x10xf32, #tpu.memory_space<vmem>>, %arg6: memref<10x20xbf16, #tpu.memory_space<vmem>>, %arg7: memref<1x20xf32, #tpu.memory_space<vmem>>, %arg8: memref<20x300xbf16, #tpu.memory_space<vmem>>, %arg9: memref<1x300xf32, #tpu.memory_space<vmem>>, %arg10: memref<256x300xf32, #tpu.memory_space<vmem>>) attributes {dimension_semantics = [#tpu.dimension_semantics<parallel>], iteration_bounds = array<i64: 1>, scalar_prefetch = 0 : i64, scratch_operands = 0 : i64, tpu.core_type = #tpu.core_type<tc>, window_params = [{transform_indices = @transform_0, window_bounds = array<i64: 256, 300>}, {pipeline_mode = #tpu.pipeline_mode<synchronous>, transform_indices = @transform_1, window_bounds = array<i64: 300, 20>}, {pipeline_mode = #tpu.pipeline_mode<synchronous>, transform_indices = @transform_2, window_bounds = array<i64: 1, 20>}, {pipeline_mode = #tpu.pipeline_mode<synchronous>, transform_indices = @transform_3, window_bounds = array<i64: 20, 10>}, {pipeline_mode = #tpu.pipeline_mode<synchronous>, transform_indices = @transform_4, window_bounds = array<i64: 1, 10>}, {pipeline_mode = #tpu.pipeline_mode<synchronous>, transform_indices = @transform_5, window_bounds = array<i64: 10, 20>}, {pipeline_mode = #tpu.pipeline_mode<synchronous>, transform_indices = @transform_6, window_bounds = array<i64: 1, 20>}, {pipeline_mode = #tpu.pipeline_mode<synchronous>, transform_indices = @transform_7, window_bounds = array<i64: 20, 300>}, {pipeline_mode = #tpu.pipeline_mode<synchronous>, transform_indices = @transform_8, window_bounds = array<i64: 1, 300>}, {transform_indices = @transform_9, window_bounds = array<i64: 256, 300>}]} {
    %c0 = arith.constant 0 : index
    %c0_0 = arith.constant 0 : index
    %0 = vector.load %arg1[%c0, %c0_0] : memref<256x300xf32, #tpu.memory_space<vmem>>, vector<256x300xf32>
    %1 = arith.truncf %0 : vector<256x300xf32> to vector<256x300xbf16>
    %c0_1 = arith.constant 0 : index
    %c0_2 = arith.constant 0 : index
    %2 = vector.load %arg2[%c0_1, %c0_2] : memref<300x20xbf16, #tpu.memory_space<vmem>>, vector<300x20xbf16>
    %cst = arith.constant dense<0.000000e+00> : vector<256x20xf32>
    %3 = tpu.matmul %1, %2, %cst {dimension_numbers = #tpu.dot_dimension_numbers<[1], [0], [0], [1], [0, 0, 1, 1], [], []>} : vector<256x300xbf16>, vector<300x20xbf16>, vector<256x20xf32> -> vector<256x20xf32>
    %c0_3 = arith.constant 0 : index
    %c0_4 = arith.constant 0 : index
    %4 = vector.load %arg3[%c0_3, %c0_4] : memref<1x20xf32, #tpu.memory_space<vmem>>, vector<1x20xf32>
    %5 = vector.broadcast %4 : vector<1x20xf32> to vector<256x20xf32>
    %6 = arith.addf %3, %5 : vector<256x20xf32>
    %cst_5 = arith.constant 0.000000e+00 : f32
    %7 = vector.broadcast %cst_5 : f32 to vector<256x20xf32>
    %8 = arith.subf %7, %6 : vector<256x20xf32>
    %9 = math.exp %8 : vector<256x20xf32>
    %cst_6 = arith.constant 1.000000e+00 : f32
    %10 = vector.broadcast %cst_6 : f32 to vector<256x20xf32>
    %11 = arith.addf %10, %9 : vector<256x20xf32>
    %12 = tpu.reciprocal %11 {approx = true} : vector<256x20xf32> -> vector<256x20xf32>
    %13 = arith.truncf %12 : vector<256x20xf32> to vector<256x20xbf16>
    %c0_7 = arith.constant 0 : index
    %c0_8 = arith.constant 0 : index
    %14 = vector.load %arg4[%c0_7, %c0_8] : memref<20x10xbf16, #tpu.memory_space<vmem>>, vector<20x10xbf16>
    %cst_9 = arith.constant dense<0.000000e+00> : vector<256x10xf32>
    %15 = tpu.matmul %13, %14, %cst_9 {dimension_numbers = #tpu.dot_dimension_numbers<[1], [0], [0], [1], [0, 0, 1, 1], [], []>} : vector<256x20xbf16>, vector<20x10xbf16>, vector<256x10xf32> -> vector<256x10xf32>
    %c0_10 = arith.constant 0 : index
    %c0_11 = arith.constant 0 : index
    %16 = vector.load %arg5[%c0_10, %c0_11] : memref<1x10xf32, #tpu.memory_space<vmem>>, vector<1x10xf32>
    %17 = vector.broadcast %16 : vector<1x10xf32> to vector<256x10xf32>
    %18 = arith.addf %15, %17 : vector<256x10xf32>
    %cst_12 = arith.constant 0.000000e+00 : f32
    %19 = vector.broadcast %cst_12 : f32 to vector<256x10xf32>
    %20 = arith.subf %19, %18 : vector<256x10xf32>
    %21 = math.exp %20 : vector<256x10xf32>
    %cst_13 = arith.constant 1.000000e+00 : f32
    %22 = vector.broadcast %cst_13 : f32 to vector<256x10xf32>
    %23 = arith.addf %22, %21 : vector<256x10xf32>
    %24 = tpu.reciprocal %23 {approx = true} : vector<256x10xf32> -> vector<256x10xf32>
    %25 = arith.truncf %24 : vector<256x10xf32> to vector<256x10xbf16>
    %c0_14 = arith.constant 0 : index
    %c0_15 = arith.constant 0 : index
    %26 = vector.load %arg6[%c0_14, %c0_15] : memref<10x20xbf16, #tpu.memory_space<vmem>>, vector<10x20xbf16>
    %cst_16 = arith.constant dense<0.000000e+00> : vector<256x20xf32>
    %27 = tpu.matmul %25, %26, %cst_16 {dimension_numbers = #tpu.dot_dimension_numbers<[1], [0], [0], [1], [0, 0, 1, 1], [], []>} : vector<256x10xbf16>, vector<10x20xbf16>, vector<256x20xf32> -> vector<256x20xf32>
    %c0_17 = arith.constant 0 : index
    %c0_18 = arith.constant 0 : index
    %28 = vector.load %arg7[%c0_17, %c0_18] : memref<1x20xf32, #tpu.memory_space<vmem>>, vector<1x20xf32>
    %29 = vector.broadcast %28 : vector<1x20xf32> to vector<256x20xf32>
    %30 = arith.addf %27, %29 : vector<256x20xf32>
    %cst_19 = arith.constant 0.000000e+00 : f32
    %31 = vector.broadcast %cst_19 : f32 to vector<256x20xf32>
    %32 = arith.subf %31, %30 : vector<256x20xf32>
    %33 = math.exp %32 : vector<256x20xf32>
    %cst_20 = arith.constant 1.000000e+00 : f32
    %34 = vector.broadcast %cst_20 : f32 to vector<256x20xf32>
    %35 = arith.addf %34, %33 : vector<256x20xf32>
    %36 = tpu.reciprocal %35 {approx = true} : vector<256x20xf32> -> vector<256x20xf32>
    %37 = arith.truncf %36 : vector<256x20xf32> to vector<256x20xbf16>
    %c0_21 = arith.constant 0 : index
    %c0_22 = arith.constant 0 : index
    %38 = vector.load %arg8[%c0_21, %c0_22] : memref<20x300xbf16, #tpu.memory_space<vmem>>, vector<20x300xbf16>
    %cst_23 = arith.constant dense<0.000000e+00> : vector<256x300xf32>
    %39 = tpu.matmul %37, %38, %cst_23 {dimension_numbers = #tpu.dot_dimension_numbers<[1], [0], [0], [1], [0, 0, 1, 1], [], []>} : vector<256x20xbf16>, vector<20x300xbf16>, vector<256x300xf32> -> vector<256x300xf32>
    %c0_24 = arith.constant 0 : index
    %c0_25 = arith.constant 0 : index
    %40 = vector.load %arg9[%c0_24, %c0_25] : memref<1x300xf32, #tpu.memory_space<vmem>>, vector<1x300xf32>
    %41 = vector.broadcast %40 : vector<1x300xf32> to vector<256x300xf32>
    %42 = arith.addf %39, %41 : vector<256x300xf32>
    %c0_26 = arith.constant 0 : index
    %c0_27 = arith.constant 0 : index
    %43 = vector.load %arg10[%c0_26, %c0_27] : memref<256x300xf32, #tpu.memory_space<vmem>>, vector<256x300xf32>
    tpu.vector_store %arg10[%c0_26, %c0_27], %42 {strides = array<i32>} : memref<256x300xf32, #tpu.memory_space<vmem>>, vector<256x300xf32>,
    return
  }
  func.func @transform_0(%arg0: i32) -> (i32, i32) {
    %c0_i32 = arith.constant 0 : i32
    %c0_i32_0 = arith.constant 0 : i32
    return %arg0, %c0_i32 : i32, i32
  }
  func.func @transform_1(%arg0: i32) -> (i32, i32) {
    %c0_i32 = arith.constant 0 : i32
    %c0_i32_0 = arith.constant 0 : i32
    %c0_i32_1 = arith.constant 0 : i32
    return %c0_i32, %c0_i32_0 : i32, i32
  }
  func.func @transform_2(%arg0: i32) -> (i32, i32) {
    %c0_i32 = arith.constant 0 : i32
    %c0_i32_0 = arith.constant 0 : i32
    %c0_i32_1 = arith.constant 0 : i32
    return %c0_i32, %c0_i32_0 : i32, i32
  }
  func.func @transform_3(%arg0: i32) -> (i32, i32) {
    %c0_i32 = arith.constant 0 : i32
    %c0_i32_0 = arith.constant 0 : i32
    %c0_i32_1 = arith.constant 0 : i32
    return %c0_i32, %c0_i32_0 : i32, i32
  }
  func.func @transform_4(%arg0: i32) -> (i32, i32) {
    %c0_i32 = arith.constant 0 : i32
    %c0_i32_0 = arith.constant 0 : i32
    %c0_i32_1 = arith.constant 0 : i32
    return %c0_i32, %c0_i32_0 : i32, i32
  }
  func.func @transform_5(%arg0: i32) -> (i32, i32) {
    %c0_i32 = arith.constant 0 : i32
    %c0_i32_0 = arith.constant 0 : i32
    %c0_i32_1 = arith.constant 0 : i32
    return %c0_i32, %c0_i32_0 : i32, i32
  }
  func.func @transform_6(%arg0: i32) -> (i32, i32) {
    %c0_i32 = arith.constant 0 : i32
    %c0_i32_0 = arith.constant 0 : i32
    %c0_i32_1 = arith.constant 0 : i32
    return %c0_i32, %c0_i32_0 : i32, i32
  }
  func.func @transform_7(%arg0: i32) -> (i32, i32) {
    %c0_i32 = arith.constant 0 : i32
    %c0_i32_0 = arith.constant 0 : i32
    %c0_i32_1 = arith.constant 0 : i32
    return %c0_i32, %c0_i32_0 : i32, i32
  }
  func.func @transform_8(%arg0: i32) -> (i32, i32) {
    %c0_i32 = arith.constant 0 : i32
    %c0_i32_0 = arith.constant 0 : i32
    %c0_i32_1 = arith.constant 0 : i32
    return %c0_i32, %c0_i32_0 : i32, i32
  }
  func.func @transform_9(%arg0: i32) -> (i32, i32) {
    %c0_i32 = arith.constant 0 : i32
    %c0_i32_0 = arith.constant 0 : i32
    return %arg0, %c0_i32 : i32, i32
  }
}

</mosaic_0001>

<bundles_post_ra>
// kernel: tpu_custom_call.1
= control target key start
LH: loop header
LB: loop body
LE: loop exit
PB: predicated region body
PF: predicated region fallthrough
CT: control target
= control target key end

     0   :  { %vm384_vm0 = vcmask 1045504   ;;  %vm335_vm1 = vcmask 359424   ;;  %vm954_vm2 = vcmask 1041408   ;;  %vm905_vm3 = vcmask 162816   ;;  %s4247_s1 = inlined_call_operand.vmem [shape: bf16[300,20], index: 1, kind: input, shape index: {}]   ;;  %s4248_s0 = inlined_call_operand.vmem [shape: f32[256,300], index: 0, kind: input, shape index: {}]   ;;  %s4249_s3 = inlined_call_operand.vmem [shape: bf16[20,10], index: 3, kind: input, shape index: {}]   ;;  %s4250_s2 = inlined_call_operand.vmem [shape: f32[1,20], index: 2, kind: input, shape index: {}]   ;;  %s4251_s5 = inlined_call_operand.vmem [shape: bf16[10,20], index: 5, kind: input, shape index: {}]   ;;  %s4252_s4 = inlined_call_operand.vmem [shape: f32[1,10], index: 4, kind: input, shape index: {}]   ;;  %s4253_s7 = inlined_call_operand.vmem [shape: bf16[20,300], index: 7, kind: input, shape index: {}]   ;;  %s4254_s6 = inlined_call_operand.vmem [shape: f32[1,20], index: 6, kind: input, shape index: {}]   ;;  %s4255_s8 = inlined_call_operand.vmem [shape: f32[1,300], index: 8, kind: input, shape index: {}]   ;;  %s4256_s9 = inlined_call_operand.vmem [shape: f32[256,300], index: 9, kind: output, shape index: {}]  }
   0x1   :  { %v2706_v0 = vld [vmem:[%s4247_s1 + $0x78] sm:$0xff]   ;;  %v2708_v2 = vld [vmem:[%s4247_s1 + $0x70] sm:$0xff]   ;;  %v2710_v4 = vld [vmem:[%s4247_s1 + $0x68] sm:$0xff]   ;;  %vm1358_vm4 = vcmask 1044480   ;;  %vm1309_vm5 = vcmask 80896  }
   0x2   :  { %v2707_v1 = vld [vmem:[%s4247_s1 + $0x38] sm:$0xff]   ;;  %2369 = vmatprep.subr.bf16.mxu0 %v2706_v0  ;;  %v2709_v3 = vld [vmem:[%s4247_s1 + $0x30] sm:$0xff]   ;;  %v2711_v5 = vld [vmem:[%s4247_s1 + $0x28] sm:$0xff]  }
   0x3   :  { %2370 = vmatpush3.bf16.msra.mxu0 %v2707_v1  ;;  %v2712_v6 = vld [vmem:[%s4247_s1 + $0x60] sm:$0xff]   ;;  %v2714_v8 = vld [vmem:[%s4247_s1 + $0x58] sm:$0xff]   ;;  %v2719_v9 = vld [vmem:[%s4247_s1 + $0x90] sm:$0x3f]  }
   0x4   :  { %2371 = vmatprep.subr.bf16.mxu0 %v2708_v2  ;;  %v2713_v7 = vld [vmem:[%s4247_s1 + $0x20] sm:$0xff]   ;;  %v2715_v10 = vld [vmem:[%s4247_s1 + $0x18] sm:$0xff]   ;;  %v2716_v11 = vld [vmem:[%s4247_s1 + $0x50] sm:$0xff]   ;;  %2701 = vmatprep.subr.msk.bf16.mxu1 %vm384_vm0, %v2719_v9  ;;  %v386_v12 = vsel %vm384_vm0, %v2719_v9, 0 }
   0x5   :  { %2554 = vmatpush3.bf16.msra.mxu1 %v386_v12  ;;  %v2722_v13 = vld [vmem:[%s4247_s1 + $0x88] sm:$0xff]   ;;  %v2717_v14 = vld [vmem:[%s4247_s1 + $0x10] sm:$0xff]   ;;  %v37_v16 = vld [vmem:[%s4248_s0 + $0x20] sm:$0xff] }
   0x6   :  { %2555 = vmatprep.subr.bf16.mxu1 %v2722_v13  ;;  %v34_v15 = vld [vmem:[%s4248_s0 + $0x8] sm:$0xff]  ;;  %v2724_v19 = vld [vmem:[%s4247_s1 + $0x80] sm:$0xff]   ;;  %v35_v20 = vld [vmem:[%s4248_s0 + $0x10] sm:$0xff] }
   0x7   :  { %2372 = vmatpush3.bf16.msra.mxu0 %v2709_v3  ;;  %v2718_v17 = vld [vmem:[%s4247_s1 + $0x48] sm:$0xff]   ;;  %v130_v18 = vpack.c.bf16 %v37_v16, %v34_v15  ;;  %v41_v23 = vld [vmem:[%s4248_s0 + $0x40] sm:$0xff]  ;;  %v44_v24 = vld [vmem:[%s4248_s0 + $0x58] sm:$0xff] }
   0x8   :  { %2373 = vmatprep.subr.bf16.mxu0 %v2710_v4  ;;  %v38_v21 = vld [vmem:[%s4248_s0 + $0x28] sm:$0xff]  ;;  %v134_v26 = vpack.c.bf16 %v44_v24, %v41_v23  ;;  %v2721_v27 = vld [vmem:[%s4247_s1 + $0x40] sm:$0xff]   ;;  %v47_v28 = vld [vmem:[%s4248_s0 + $0x70] sm:$0xff] }
   0x9   :  { %2556 = vmatpush3.bf16.msra.mxu1 %v2722_v13  ;;  %420 = vmatprep.mubr.bf16.mxu0 %v130_v18  ;;  %v131_v22 = vpack.c.bf16 %v38_v21, %v35_v20  ;;  %v2720_v25 = vld [vmem:[%s4247_s1 + $0x8] sm:$0xff]   ;;  %v2723_v31 = vld [vmem:[%s4247_s1] sm:$0xff]   ;;  %v36_v33 = vld [vmem:[%s4248_s0 + $0x18] sm:$0xff] }
   0xa   :  { %2557 = vmatprep.subr.bf16.mxu1 %v2724_v19  ;;  %v50_v29 = vld [vmem:[%s4248_s0 + $0x88] sm:$0xff]  ;;  %v33_v32 = vld [vmem:[%s4248_s0] sm:$0xff]  ;;  %v40_v34 = vld [vmem:[%s4248_s0 + $0x38] sm:$0xff] }
   0xb   :  { %2374 = vmatpush3.bf16.msra.mxu0 %v2711_v5  ;;  %2559 = vmatprep.mubr.msk.bf16.mxu1 %vm335_vm1, %v131_v22  ;;  %v137_v30 = vpack.c.bf16 %v50_v29, %v47_v28  ;;  %v43_v35 = vld [vmem:[%s4248_s0 + $0x50] sm:$0xff]  ;;  %v53_v36 = vld [vmem:[%s4248_s0 + $0xa0] sm:$0xff]  ;;  %v56_v37 = vld [vmem:[%s4248_s0 + $0xb8] sm:$0xff]  ;;  %v129_v40 = vpack.c.bf16 %v36_v33, %v33_v32 }
   0xc   :  { %2375 = vmatprep.subr.bf16.mxu0 %v2712_v6  ;;  %v59_v38 = vld [vmem:[%s4248_s0 + $0xd0] sm:$0xff]  ;;  %v62_v39 = vld [vmem:[%s4248_s0 + $0xe8] sm:$0xff]  ;;  %v133_v41 = vpack.c.bf16 %v43_v35, %v40_v34  ;;  %v140_v42 = vpack.c.bf16 %v56_v37, %v53_v36  ;;  %v49_v47 = vld [vmem:[%s4248_s0 + $0x80] sm:$0xff] }
   0xd   :  { %2558 = vmatpush3.bf16.msra.mxu1 %v2724_v19  ;;  %v143_v43 = vpack.c.bf16 %v62_v39, %v59_v38  ;;  %v39_v44 = vld [vmem:[%s4248_s0 + $0x30] sm:$0xff]  ;;  %v42_v45 = vld [vmem:[%s4248_s0 + $0x48] sm:$0xff]  ;;  %v65_v48 = vld [vmem:[%s4248_s0 + $0x100] sm:$0xff] }
   0xe   :  { %v46_v46 = vld [vmem:[%s4248_s0 + $0x68] sm:$0xff]  ;;  %v68_v49 = vld [vmem:[%s4248_s0 + $0x118] sm:$0xff]  ;;  %v71_v50 = vld [vmem:[%s4248_s0 + $0x130] sm:$0xff]  ;;  %v132_v52 = vpack.c.bf16 %v42_v45, %v39_v44 }
   0xf   :  { %2376 = vmatpush3.bf16.msra.mxu0 %v2713_v7  ;;  %v74_v51 = vld [vmem:[%s4248_s0 + $0x148] sm:$0xff]  ;;  %v136_v53 = vpack.c.bf16 %v49_v47, %v46_v46  ;;  %v146_v54 = vpack.c.bf16 %v68_v49, %v65_v48  ;;  %v45_v56 = vld [vmem:[%s4248_s0 + $0x60] sm:$0xff]  ;;  %v48_v57 = vld [vmem:[%s4248_s0 + $0x78] sm:$0xff] }
  0x10   :  { %2377 = vmatprep.subr.bf16.mxu0 %v2714_v8  ;;  %2560 = vmatmul.mubr.msk.bf16.vlgmr.msra.gmra.mxu1 %vm335_vm1, %v134_v26  ;;  %v149_v55 = vpack.c.bf16 %v74_v51, %v71_v50  ;;  %v52_v58 = vld [vmem:[%s4248_s0 + $0x98] sm:$0xff]  ;;  %v55_v59 = vld [vmem:[%s4248_s0 + $0xb0] sm:$0xff]  ;;  %v77_v60 = vld [vmem:[%s4248_s0 + $0x160] sm:$0xff]  ;;  %v135_v0 = vpack.c.bf16 %v48_v57, %v45_v56 }
  0x11   :  { %2563 = vmatprep.mubr.msk.bf16.mxu1 %vm335_vm1, %v137_v30  ;;  %v80_v61 = vld [vmem:[%s4248_s0 + $0x178] sm:$0xff]  ;;  %v83_v62 = vld [vmem:[%s4248_s0 + $0x190] sm:$0xff]  ;;  %v86_v63 = vld [vmem:[%s4248_s0 + $0x1a8] sm:$0xff]  ;;  %v139_v1 = vpack.c.bf16 %v55_v59, %v52_v58 }
  0x12   :  { %v152_v2 = vpack.c.bf16 %v80_v61, %v77_v60  ;;  %v155_v3 = vpack.c.bf16 %v86_v63, %v83_v62  ;;  %v51_v4 = vld [vmem:[%s4248_s0 + $0x90] sm:$0xff]  ;;  %v54_v5 = vld [vmem:[%s4248_s0 + $0xa8] sm:$0xff]  ;;  %v61_v7 = vld [vmem:[%s4248_s0 + $0xe0] sm:$0xff] }
  0x13   :  { %2378 = vmatpush3.bf16.msra.mxu0 %v2715_v10  ;;  %v58_v6 = vld [vmem:[%s4248_s0 + $0xc8] sm:$0xff]  ;;  %v89_v8 = vld [vmem:[%s4248_s0 + $0x1c0] sm:$0xff]  ;;  %v92_v9 = vld [vmem:[%s4248_s0 + $0x1d8] sm:$0xff]  ;;  %v138_v12 = vpack.c.bf16 %v54_v5, %v51_v4 }
  0x14   :  { %2379 = vmatprep.subr.bf16.mxu0 %v2716_v11  ;;  %v95_v10 = vld [vmem:[%s4248_s0 + $0x1f0] sm:$0xff]  ;;  %v98_v11 = vld [vmem:[%s4248_s0 + $0x208] sm:$0xff]  ;;  %v142_v13 = vpack.c.bf16 %v61_v7, %v58_v6  ;;  %v57_v16 = vld [vmem:[%s4248_s0 + $0xc0] sm:$0xff] }
  0x15   :  { %v161_v15 = vpack.c.bf16 %v98_v11, %v95_v10  ;;  %v64_v18 = vld [vmem:[%s4248_s0 + $0xf8] sm:$0xff]  ;;  %v67_v19 = vld [vmem:[%s4248_s0 + $0x110] sm:$0xff]  ;;  %v101_v20 = vld [vmem:[%s4248_s0 + $0x220] sm:$0xff] }
  0x16   :  { %v104_v21 = vld [vmem:[%s4248_s0 + $0x238] sm:$0xff]  ;;  %v107_v22 = vld [vmem:[%s4248_s0 + $0x250] sm:$0xff]  ;;  %v110_v23 = vld [vmem:[%s4248_s0 + $0x268] sm:$0xff] }
  0x17   :  { %2380 = vmatpush3.bf16.msra.mxu0 %v2717_v14  ;;  %v158_v14 = vpack.c.bf16 %v92_v9, %v89_v8  ;;  %v164_v26 = vpack.c.bf16 %v104_v21, %v101_v20  ;;  %v63_v28 = vld [vmem:[%s4248_s0 + $0xf0] sm:$0xff]  ;;  %v66_v29 = vld [vmem:[%s4248_s0 + $0x108] sm:$0xff]  ;;  %v113_v32 = vld [vmem:[%s4248_s0 + $0x280] sm:$0xff] }
  0x18   :  { %2381 = vmatprep.subr.bf16.mxu0 %v2718_v17  ;;  %2564 = vmatmul.mubr.msk.bf16.gmra.mxu1 %vm335_vm1, %v140_v42  ;;  %v60_v17 = vld [vmem:[%s4248_s0 + $0xd8] sm:$0xff]  ;;  %v70_v30 = vld [vmem:[%s4248_s0 + $0x128] sm:$0xff]  ;;  %v119_v34 = vld [vmem:[%s4248_s0 + $0x2b0] sm:$0xff]  ;;  %v144_v36 = vpack.c.bf16 %v66_v29, %v63_v28 }
  0x19   :  { %2567 = vmatprep.mubr.msk.bf16.mxu1 %vm335_vm1, %v143_v43  ;;  %v141_v24 = vpack.c.bf16 %v60_v17, %v57_v16  ;;  %v116_v33 = vld [vmem:[%s4248_s0 + $0x298] sm:$0xff]  ;;  %v122_v35 = vld [vmem:[%s4248_s0 + $0x2c8] sm:$0xff]  ;;  %v79_v43 = vld [vmem:[%s4248_s0 + $0x170] sm:$0xff] }
  0x1a   :  { %v170_v38 = vpack.c.bf16 %v116_v33, %v113_v32  ;;  %v173_v39 = vpack.c.bf16 %v122_v35, %v119_v34  ;;  %v76_v42 = vld [vmem:[%s4248_s0 + $0x158] sm:$0xff]  ;;  %v125_v44 = vld [vmem:[%s4248_s0 + $0x2e0] sm:$0xff]  ;;  %v75_v49 = vld [vmem:[%s4248_s0 + $0x150] sm:$0xff] }
  0x1b   :  { %2382 = vmatpush3.bf16.msra.mxu0 %v2720_v25  ;;  %v145_v25 = vpack.c.bf16 %v67_v19, %v64_v18  ;;  %v128_v45 = vld [vmem:[%s4248_s0 + $0x2f8] sm:$0xff]  ;;  %v151_v47 = vpack.c.bf16 %v79_v43, %v76_v42  ;;  %v78_v50 = vld [vmem:[%s4248_s0 + $0x168] sm:$0xff]  ;;  %v91_v58 = vld [vmem:[%s4248_s0 + $0x1d0] sm:$0xff] }
  0x1c   :  { %2383 = vmatprep.subr.bf16.mxu0 %v2721_v27  ;;  %v167_v27 = vpack.c.bf16 %v110_v23, %v107_v22  ;;  %v176_v48 = vpack.c.bf16 %v128_v45, %v125_v44  ;;  %v82_v51 = vld [vmem:[%s4248_s0 + $0x188] sm:$0xff]  ;;  %v84_v56 = vld [vmem:[%s4248_s0 + $0x198] sm:$0xff]  ;;  %v87_v61 = vld [vmem:[%s4248_s0 + $0x1b0] sm:$0xff] }
  0x1d   :  { %v88_v57 = vld [vmem:[%s4248_s0 + $0x1b8] sm:$0xff]  ;;  %v90_v62 = vld [vmem:[%s4248_s0 + $0x1c8] sm:$0xff]  ;;  %v103_v6 = vld [vmem:[%s4248_s0 + $0x230] sm:$0xff] }
  0x1e   :  { %v157_v60 = vpack.c.bf16 %v91_v58, %v88_v57  ;;  %v94_v63 = vld [vmem:[%s4248_s0 + $0x1e8] sm:$0xff]  ;;  %v96_v4 = vld [vmem:[%s4248_s0 + $0x1f8] sm:$0xff]  ;;  %v99_v9 = vld [vmem:[%s4248_s0 + $0x210] sm:$0xff] }
  0x1f   :  { %2384 = vmatpush3.bf16.msra.mxu0 %v2723_v31  ;;  %v73_v31 = vld [vmem:[%s4248_s0 + $0x140] sm:$0xff]  ;;  %v100_v5 = vld [vmem:[%s4248_s0 + $0x218] sm:$0xff]  ;;  %v102_v10 = vld [vmem:[%s4248_s0 + $0x228] sm:$0xff] }
  0x20   :  { %2568 = vmatmul.mubr.msk.bf16.gmra.mxu1 %vm335_vm1, %v146_v54  ;;  %v148_v37 = vpack.c.bf16 %v73_v31, %v70_v30  ;;  %v163_v8 = vpack.c.bf16 %v103_v6, %v100_v5  ;;  %v106_v11 = vld [vmem:[%s4248_s0 + $0x248] sm:$0xff]  ;;  %v108_v16 = vld [vmem:[%s4248_s0 + $0x258] sm:$0xff]  ;;  %v115_v18 = vld [vmem:[%s4248_s0 + $0x290] sm:$0xff] }
  0x21   :  { %2571 = vmatprep.mubr.msk.bf16.mxu1 %vm335_vm1, %v149_v55  ;;  %v81_v55 = vld [vmem:[%s4248_s0 + $0x180] sm:$0xff]  ;;  %v112_v17 = vld [vmem:[%s4248_s0 + $0x278] sm:$0xff]  ;;  %v111_v21 = vld [vmem:[%s4248_s0 + $0x270] sm:$0xff] }
  0x22   :  { %421 = vmatmul.mubr.bf16.vlgmr.msra.gmra.mxu0 %v129_v40  ;;  %v69_v40 = vld [vmem:[%s4248_s0 + $0x120] sm:$0xff]  ;;  %v153_v59 = vpack.c.bf16 %v84_v56, %v81_v55  ;;  %v169_v20 = vpack.c.bf16 %v115_v18, %v112_v17  ;;  %v114_v22 = vld [vmem:[%s4248_s0 + $0x288] sm:$0xff]  ;;  %v120_v28 = vld [vmem:[%s4248_s0 + $0x2b8] sm:$0xff] }
  0x23   :  { %428 = vmatprep.mubr.bf16.mxu0 %v133_v41  ;;  %v72_v41 = vld [vmem:[%s4248_s0 + $0x138] sm:$0xff]  ;;  %v118_v23 = vld [vmem:[%s4248_s0 + $0x2a8] sm:$0xff]  ;;  %v127_v30 = vld [vmem:[%s4248_s0 + $0x2f0] sm:$0xff] }
  0x24   :  { %v147_v46 = vpack.c.bf16 %v72_v41, %v69_v40  ;;  %v124_v29 = vld [vmem:[%s4248_s0 + $0x2d8] sm:$0xff]  ;;  %v123_v33 = vld [vmem:[%s4248_s0 + $0x2d0] sm:$0xff]  ;;  %v2725_v34 = vld [vmem:[%s4249_s3 + $0x8] ss:$0 sps:$4 sm:$0x33]  }
  0x25   :  { %v175_v32 = vpack.c.bf16 %v127_v30, %v124_v29  ;;  %v126_v35 = vld [vmem:[%s4248_s0 + $0x2e8] sm:$0xff]  ;;  %2702 = vmatprep.subr.msk.bf16.mxu1 %vm954_vm2, %v2725_v34  ;;  %v3542_v43 = vld [vmem:[%s4250_s2] ss:$0 sm:$0xff] }
  0x28   :  { %2572 = vmatmul.mubr.msk.bf16.gmra.mxu1 %vm335_vm1, %v152_v2 }
  0x29   :  { %2575 = vmatprep.mubr.msk.bf16.mxu1 %vm335_vm1, %v155_v3  ;;  %v93_v3 = vld [vmem:[%s4248_s0 + $0x1e0] sm:$0xff] }
  0x2a   :  { %429 = vmatmul.mubr.bf16.gmra.mxu0 %v132_v52  ;;  %v85_v52 = vld [vmem:[%s4248_s0 + $0x1a0] sm:$0xff]  ;;  %v159_v7 = vpack.c.bf16 %v96_v4, %v93_v3 }
  0x2b   :  { %436 = vmatprep.mubr.bf16.mxu0 %v136_v53  ;;  %v150_v53 = vpack.c.bf16 %v78_v50, %v75_v49  ;;  %v154_v54 = vpack.c.bf16 %v85_v52, %v82_v51 }
  0x30   :  { %2576 = vmatmul.mubr.msk.bf16.gmra.mxu1 %vm335_vm1, %v158_v14 }
  0x31   :  { %2579 = vmatprep.mubr.msk.bf16.mxu1 %vm335_vm1, %v161_v15  ;;  %v105_v15 = vld [vmem:[%s4248_s0 + $0x240] sm:$0xff] }
  0x32   :  { %437 = vmatmul.mubr.bf16.gmra.mxu0 %v135_v0  ;;  %v97_v0 = vld [vmem:[%s4248_s0 + $0x200] sm:$0xff]  ;;  %v165_v19 = vpack.c.bf16 %v108_v16, %v105_v15 }
  0x33   :  { %444 = vmatprep.mubr.bf16.mxu0 %v139_v1  ;;  %v156_v1 = vpack.c.bf16 %v90_v62, %v87_v61  ;;  %v160_v2 = vpack.c.bf16 %v97_v0, %v94_v63 }
  0x38   :  { %2580 = vmatmul.mubr.msk.bf16.gmra.mxu1 %vm335_vm1, %v164_v26 }
  0x39   :  { %2583 = vmatprep.mubr.msk.bf16.mxu1 %vm335_vm1, %v167_v27  ;;  %v117_v27 = vld [vmem:[%s4248_s0 + $0x2a0] sm:$0xff] }
  0x3a   :  { %445 = vmatmul.mubr.bf16.gmra.mxu0 %v138_v12  ;;  %v109_v12 = vld [vmem:[%s4248_s0 + $0x260] sm:$0xff]  ;;  %v171_v31 = vpack.c.bf16 %v120_v28, %v117_v27 }
  0x3b   :  { %452 = vmatprep.mubr.bf16.mxu0 %v142_v13  ;;  %v162_v13 = vpack.c.bf16 %v102_v10, %v99_v9  ;;  %v166_v14 = vpack.c.bf16 %v109_v12, %v106_v11 }
  0x40   :  { %2584 = vmatmul.mubr.msk.bf16.gmra.mxu1 %vm335_vm1, %v170_v38  ;;  %v2726_v38 = vld [vmem:[%s4249_s3] sm:$0xff]  }
  0x41   :  { %2587 = vmatprep.mubr.msk.bf16.mxu1 %vm335_vm1, %v173_v39 }
  0x42   :  { %453 = vmatmul.mubr.bf16.gmra.mxu0 %v141_v24  ;;  %v121_v24 = vld [vmem:[%s4248_s0 + $0x2c0] sm:$0xff] }
  0x43   :  { %460 = vmatprep.mubr.bf16.mxu0 %v145_v25  ;;  %v168_v25 = vpack.c.bf16 %v114_v22, %v111_v21  ;;  %v172_v26 = vpack.c.bf16 %v121_v24, %v118_v23 }
  0x48   :  { %2588 = vmatmul.mubr.msk.bf16.gmra.mxu1 %vm335_vm1, %v176_v48 }
  0x4a   :  { %461 = vmatmul.mubr.bf16.gmra.mxu0 %v144_v36  ;;  %v956_v36 = vsel %vm954_vm2, %v2725_v34, 0 }
  0x4b   :  { %468 = vmatprep.mubr.bf16.mxu0 %v148_v37  ;;  %2592 = vmatpush3.bf16.msra.mxu1 %v956_v36  ;;  %v174_v37 = vpack.c.bf16 %v126_v35, %v123_v33 }
  0x4c   :  { %2593 = vmatprep.subr.bf16.mxu1 %v2726_v38 }
  0x4f   :  { %2594 = vmatpush3.bf16.msra.mxu1 %v2726_v38 }
  0x52   :  { %469 = vmatmul.mubr.bf16.gmra.mxu0 %v147_v46 }
  0x53   :  { %476 = vmatprep.mubr.bf16.mxu0 %v151_v47 }
  0x5a   :  { %477 = vmatmul.mubr.bf16.gmra.mxu0 %v150_v53 }
  0x5b   :  { %484 = vmatprep.mubr.bf16.mxu0 %v154_v54 }
  0x62   :  { %485 = vmatmul.mubr.bf16.gmra.mxu0 %v153_v59 }
  0x63   :  { %492 = vmatprep.mubr.bf16.mxu0 %v157_v60 }
  0x6a   :  { %493 = vmatmul.mubr.bf16.gmra.mxu0 %v156_v1 }
  0x6b   :  { %500 = vmatprep.mubr.bf16.mxu0 %v160_v2 }
  0x72   :  { %501 = vmatmul.mubr.bf16.gmra.mxu0 %v159_v7 }
  0x73   :  { %508 = vmatprep.mubr.bf16.mxu0 %v163_v8 }
  0x7a   :  { %509 = vmatmul.mubr.bf16.gmra.mxu0 %v162_v13 }
  0x7b   :  { %516 = vmatprep.mubr.bf16.mxu0 %v166_v14 }
  0x82   :  { %517 = vmatmul.mubr.bf16.gmra.mxu0 %v165_v19 }
  0x83   :  { %524 = vmatprep.mubr.bf16.mxu0 %v169_v20 }
  0x8a   :  { %525 = vmatmul.mubr.bf16.gmra.mxu0 %v168_v25 }
  0x8b   :  { %532 = vmatprep.mubr.bf16.mxu0 %v172_v26 }
  0x92   :  { %533 = vmatmul.mubr.bf16.gmra.mxu0 %v171_v31 }
  0x93   :  { %540 = vmatprep.mubr.bf16.mxu0 %v175_v32 }
  0x9a   :  { %541 = vmatmul.mubr.bf16.gmra.mxu0 %v174_v37 }
  0xd0   :  { %v2561_v39 = vpop.f32.mrf.mxu1 }
  0xd2   :  { %v583_v41 = vpop.f32.mrf.mxu1 }
  0xd4   :  { %v2562_v46 = vpop.f32.mrf.mxu1 }
  0xd6   :  { %v586_v52 = vpop.f32.mrf.mxu1 }
  0xd8   :  { %v2565_v60 = vpop.f32.mrf.mxu1 }
  0xda   :  { %v599_v4 = vpop.f32.mrf.mxu1 }
  0xdc   :  { %v2566_v12 = vpop.f32.mrf.mxu1 }
  0xde   :  { %v602_v20 = vpop.f32.mrf.mxu1 }
  0xe0   :  { %v2569_v30 = vpop.f32.mrf.mxu1 }
  0xe2   :  { %v2385_v40 = vpop.f32.mrf.mxu0 }
  0xe4   :  { %v2386_v42 = vpop.f32.mrf.mxu0 }
  0xe5   :  { %v2387_v44 = vadd.f32 %v2386_v42, %v2385_v40  ;;  %v615_v40 = vpop.f32.mrf.mxu1 }
  0xe6   :  { %v2388_v45 = vpop.f32.mrf.mxu0 }
  0xe7   :  { %v423_v47 = vadd.f32 %v2387_v44, %v3542_v43 }
  0xe8   :  { %v2389_v48 = vpop.f32.mrf.mxu0 }
  0xe9   :  { %v2390_v49 = vadd.f32 %v2389_v48, %v2388_v45  ;;  %v584_v50 = vadd.f32 %v583_v41, %v423_v47 }
  0xea   :  { %v2391_v51 = vpop.f32.mrf.mxu0 }
  0xeb   :  { %v710_v53 = vsub.f32 0.0, %v584_v50  ;;  %v426_v54 = vadd.f32 %v2390_v49, %v3542_v43 }
  0xec   :  { %v2392_v55 = vpop.f32.mrf.mxu0 }
  0xed   :  { %v742_v56 = vmul.f32 1.442695, %v710_v53  ;;  %v2393_v57 = vadd.f32 %v2392_v55, %v2391_v51  ;;  %v587_v58 = vadd.f32 %v586_v52, %v426_v54  ;;  %v2570_v51 = vpop.f32.mrf.mxu1 }
  0xee   :  { %v2394_v59 = vpop.f32.mrf.mxu0 }
  0xef   :  { %2735 = vpow2.f32 %v742_v56  ;;  %v431_v61 = vadd.f32 %v2393_v57, %v3542_v43  ;;  %v711_v62 = vsub.f32 0.0, %v587_v58 }
  0xf0   :  { %v2395_v63 = vpop.f32.mrf.mxu0 }
  0xf1   :  { %v592_v0 = vadd.f32 %v2561_v39, %v431_v61  ;;  %v744_v1 = vmul.f32 1.442695, %v711_v62  ;;  %v2396_v2 = vadd.f32 %v2395_v63, %v2394_v59  ;;  %v618_v61 = vpop.f32.mrf.mxu1 }
  0xf2   :  { %v2397_v3 = vpop.f32.mrf.mxu0 }
  0xf3   :  { %v712_v5 = vsub.f32 0.0, %v592_v0  ;;  %2737 = vpow2.f32 %v744_v1  ;;  %v434_v6 = vadd.f32 %v2396_v2, %v3542_v43 }
  0xf4   :  { %v2398_v7 = vpop.f32.mrf.mxu0 }
  0xf5   :  { %v746_v8 = vmul.f32 1.442695, %v712_v5  ;;  %v595_v9 = vadd.f32 %v2562_v46, %v434_v6  ;;  %v2399_v10 = vadd.f32 %v2398_v7, %v2397_v3  ;;  %v3554_v7 = vpop.f32.mrf.mxu1 }
  0xf6   :  { %v2400_v11 = vpop.f32.mrf.mxu0 }
  0xf7   :  { %2739 = vpow2.f32 %v746_v8  ;;  %v713_v13 = vsub.f32 0.0, %v595_v9  ;;  %v439_v14 = vadd.f32 %v2399_v10, %v3542_v43 }
  0xf8   :  { %v2401_v15 = vpop.f32.mrf.mxu0 }
  0xf9   :  { %v748_v16 = vmul.f32 1.442695, %v713_v13  ;;  %v2402_v17 = vadd.f32 %v2401_v15, %v2400_v11  ;;  %v600_v18 = vadd.f32 %v599_v4, %v439_v14 }
  0xfa   :  { %v2403_v19 = vpop.f32.mrf.mxu0 }
  0xfb   :  { %2741 = vpow2.f32 %v748_v16  ;;  %v714_v21 = vsub.f32 0.0, %v600_v18  ;;  %v442_v22 = vadd.f32 %v2402_v17, %v3542_v43 }
  0xfc   :  { %v2736_v23 = vpop.eup %2735  ;;  %v2404_v24 = vpop.f32.mrf.mxu0 }
  0xfd   :  { %v750_v25 = vmul.f32 1.442695, %v714_v21  ;;  %v2405_v26 = vadd.f32 %v2404_v24, %v2403_v19  ;;  %v603_v27 = vadd.f32 %v602_v20, %v442_v22  ;;  %v806_v28 = vadd.f32 1.0, %v2736_v23  ;;  %v631_v20 = vpop.f32.mrf.mxu1 }
  0xfe   :  { %v2406_v29 = vpop.f32.mrf.mxu0 }
  0xff   :  { %v447_v31 = vadd.f32 %v2405_v26, %v3542_v43  ;;  %v715_v32 = vsub.f32 0.0, %v603_v27  ;;  %2743 = vpow2.f32 %v750_v25 }
 0x100   :  { %v2738_v33 = vpop.eup %2737  ;;  %v2407_v34 = vpop.f32.mrf.mxu0  ;;  %2745 = vrcp.f32 %v806_v28 }
 0x101   :  { %v807_v35 = vadd.f32 1.0, %v2738_v33  ;;  %v608_v36 = vadd.f32 %v2565_v60, %v447_v31  ;;  %v752_v37 = vmul.f32 1.442695, %v715_v32  ;;  %v2408_v38 = vadd.f32 %v2407_v34, %v2406_v29 }
 0x102   :  { %v2409_v39 = vpop.f32.mrf.mxu0 }
 0x103   :  { %2747 = vrcp.f32 %v807_v35  ;;  %v716_v41 = vsub.f32 0.0, %v608_v36  ;;  %v450_v42 = vadd.f32 %v2408_v38, %v3542_v43 }
 0x104   :  { %v2740_v44 = vpop.eup %2739  ;;  %2749 = vpow2.f32 %v752_v37  ;;  %v2410_v45 = vpop.f32.mrf.mxu0 }
 0x105   :  { %v754_v46 = vmul.f32 1.442695, %v716_v41  ;;  %v611_v47 = vadd.f32 %v2566_v12, %v450_v42  ;;  %v2411_v48 = vadd.f32 %v2410_v45, %v2409_v39  ;;  %v808_v49 = vadd.f32 1.0, %v2740_v44 }
 0x106   :  { %v2412_v50 = vpop.f32.mrf.mxu0 }
 0x107   :  { %v717_v52 = vsub.f32 0.0, %v611_v47  ;;  %v455_v53 = vadd.f32 %v2411_v48, %v3542_v43  ;;  %2751 = vpow2.f32 %v754_v46 }
 0x108   :  { %v2742_v54 = vpop.eup %2741  ;;  %v2413_v55 = vpop.f32.mrf.mxu0  ;;  %2753 = vrcp.f32 %v808_v49 }
 0x109   :  { %v809_v56 = vadd.f32 1.0, %v2742_v54  ;;  %v756_v57 = vmul.f32 1.442695, %v717_v52  ;;  %v2414_v58 = vadd.f32 %v2413_v55, %v2412_v50  ;;  %v616_v59 = vadd.f32 %v615_v40, %v455_v53 }
 0x10a   :  { %v2415_v60 = vpop.f32.mrf.mxu0 }
 0x10b   :  { %2755 = vrcp.f32 %v809_v56  ;;  %v458_v62 = vadd.f32 %v2414_v58, %v3542_v43  ;;  %v718_v63 = vsub.f32 0.0, %v616_v59 }
 0x10c   :  { %2757 = vpow2.f32 %v756_v57  ;;  %v2416_v0 = vpop.f32.mrf.mxu0  ;;  %v2744_v1 = vpop.eup %2743 }
 0x10d   :  { %v758_v2 = vmul.f32 1.442695, %v718_v63  ;;  %v2417_v3 = vadd.f32 %v2416_v0, %v2415_v60  ;;  %v619_v4 = vadd.f32 %v618_v61, %v458_v62  ;;  %v810_v5 = vadd.f32 1.0, %v2744_v1  ;;  %v2746_v8 = vpop.eup %2745 }
 0x10e   :  { %v2418_v6 = vpop.f32.mrf.mxu0 }
 0x10f   :  { %2759 = vpow2.f32 %v758_v2  ;;  %v463_v9 = vadd.f32 %v2417_v3, %v3542_v43  ;;  %v719_v10 = vsub.f32 0.0, %v619_v4 }
 0x110   :  { %v2748_v11 = vpop.eup %2747  ;;  %v2419_v12 = vpop.f32.mrf.mxu0  ;;  %2761 = vrcp.f32 %v810_v5 }
 0x111   :  { %v2750_v13 = vpop.eup %2749  ;;  %v624_v14 = vadd.f32 %v2569_v30, %v463_v9  ;;  %v760_v15 = vmul.f32 1.442695, %v719_v10  ;;  %v2420_v16 = vadd.f32 %v2419_v12, %v2418_v6  ;;  %v870_v17 = vpack.c.bf16 %v2748_v11, %v2746_v8  ;;  %v2574_v30 = vpop.f32.mrf.mxu1 }
 0x112   :  { %v811_v18 = vadd.f32 1.0, %v2750_v13  ;;  %v2421_v19 = vpop.f32.mrf.mxu0 }
 0x113   :  { %v720_v21 = vsub.f32 0.0, %v624_v14  ;;  %2763 = vpow2.f32 %v760_v15  ;;  %v466_v22 = vadd.f32 %v2420_v16, %v3542_v43  ;;  %2595 = vmatprep.mubr.msk.bf16.mxu1 %vm905_vm3, %v870_v17  ;;  %v634_v44 = vpop.f32.mrf.mxu1 }
 0x114   :  { %2765 = vrcp.f32 %v811_v18  ;;  %v2422_v23 = vpop.f32.mrf.mxu0  ;;  %v2752_v24 = vpop.eup %2751 }
 0x115   :  { %v762_v25 = vmul.f32 1.442695, %v720_v21  ;;  %v627_v26 = vadd.f32 %v2570_v51, %v466_v22  ;;  %v2423_v27 = vadd.f32 %v2422_v23, %v2421_v19  ;;  %v812_v28 = vadd.f32 1.0, %v2752_v24  ;;  %v2754_v31 = vpop.eup %2753  ;;  %v3562_v54 = vpop.f32.mrf.mxu1 }
 0x116   :  { %v2424_v29 = vpop.f32.mrf.mxu0 }
 0x117   :  { %2767 = vpow2.f32 %v762_v25  ;;  %v721_v32 = vsub.f32 0.0, %v627_v26  ;;  %v471_v33 = vadd.f32 %v2423_v27, %v3542_v43  ;;  %v647_v3 = vpop.f32.mrf.mxu1 }
 0x118   :  { %v2756_v34 = vpop.eup %2755  ;;  %v2425_v35 = vpop.f32.mrf.mxu0  ;;  %2769 = vrcp.f32 %v812_v28 }
 0x119   :  { %v2758_v36 = vpop.eup %2757  ;;  %v764_v37 = vmul.f32 1.442695, %v721_v32  ;;  %v2426_v38 = vadd.f32 %v2425_v35, %v2424_v29  ;;  %v632_v39 = vadd.f32 %v631_v20, %v471_v33  ;;  %v871_v40 = vpack.c.bf16 %v2756_v34, %v2754_v31  ;;  %v2578_v13 = vpop.f32.mrf.mxu1 }
 0x11a   :  { %v813_v41 = vadd.f32 1.0, %v2758_v36  ;;  %v2427_v42 = vpop.f32.mrf.mxu0 }
 0x11b   :  { %2771 = vpow2.f32 %v764_v37  ;;  %v474_v45 = vadd.f32 %v2426_v38, %v3542_v43  ;;  %v722_v46 = vsub.f32 0.0, %v632_v39  ;;  %2596 = vmatmul.mubr.msk.bf16.vlgmr.msra.gmra.mxu1 %vm905_vm3, %v871_v40  ;;  %v650_v26 = vpop.f32.mrf.mxu1 }
 0x11c   :  { %v2760_v47 = vpop.eup %2759  ;;  %2773 = vrcp.f32 %v813_v41  ;;  %v2428_v48 = vpop.f32.mrf.mxu0 }
 0x11d   :  { %v766_v49 = vmul.f32 1.442695, %v722_v46  ;;  %v2429_v50 = vadd.f32 %v2428_v48, %v2427_v42  ;;  %v635_v51 = vadd.f32 %v634_v44, %v474_v45  ;;  %v814_v52 = vadd.f32 1.0, %v2760_v47  ;;  %v2762_v55 = vpop.eup %2761  ;;  %v3571_v36 = vpop.f32.mrf.mxu1 }
 0x11e   :  { %v2430_v53 = vpop.f32.mrf.mxu0 }
 0x11f   :  { %v479_v56 = vadd.f32 %v2429_v50, %v3542_v43  ;;  %v723_v57 = vsub.f32 0.0, %v635_v51  ;;  %2775 = vpow2.f32 %v766_v49  ;;  %v663_v50 = vpop.f32.mrf.mxu1 }
 0x120   :  { %v2764_v58 = vpop.eup %2763  ;;  %v2431_v59 = vpop.f32.mrf.mxu0  ;;  %2777 = vrcp.f32 %v814_v52 }
 0x121   :  { %v2766_v60 = vpop.eup %2765  ;;  %v815_v61 = vadd.f32 1.0, %v2764_v58  ;;  %v640_v62 = vadd.f32 %v3554_v7, %v479_v56  ;;  %v768_v63 = vmul.f32 1.442695, %v723_v57  ;;  %v2432_v0 = vadd.f32 %v2431_v59, %v2430_v53 }
 0x122   :  { %v2433_v1 = vpop.f32.mrf.mxu0  ;;  %v872_v2 = vpack.c.bf16 %v2766_v60, %v2762_v55  ;;  %v2582_v60 = vpop.f32.mrf.mxu1 }
 0x123   :  { %2779 = vrcp.f32 %v815_v61  ;;  %v724_v4 = vsub.f32 0.0, %v640_v62  ;;  %v482_v5 = vadd.f32 %v2432_v0, %v3542_v43 }
 0x124   :  { %v2768_v6 = vpop.eup %2767  ;;  %2781 = vpow2.f32 %v768_v63  ;;  %2599 = vmatprep.mubr.msk.bf16.mxu1 %vm905_vm3, %v872_v2  ;;  %v2434_v8 = vpop.f32.mrf.mxu0 }
 0x125   :  { %v770_v9 = vmul.f32 1.442695, %v724_v4  ;;  %v643_v10 = vadd.f32 %v2574_v30, %v482_v5  ;;  %v2435_v11 = vadd.f32 %v2434_v8, %v2433_v1  ;;  %v816_v12 = vadd.f32 1.0, %v2768_v6  ;;  %v2770_v14 = vpop.eup %2769 }
 0x126   :  { %v2436_v7 = vpop.f32.mrf.mxu0 }
 0x127   :  { %v725_v15 = vsub.f32 0.0, %v643_v10  ;;  %v487_v16 = vadd.f32 %v2435_v11, %v3542_v43  ;;  %2783 = vpow2.f32 %v770_v9  ;;  %v666_v10 = vpop.f32.mrf.mxu1 }
 0x128   :  { %v2772_v17 = vpop.eup %2771  ;;  %v2437_v18 = vpop.f32.mrf.mxu0  ;;  %2785 = vrcp.f32 %v816_v12 }
 0x129   :  { %v2774_v19 = vpop.eup %2773  ;;  %v817_v20 = vadd.f32 1.0, %v2772_v17  ;;  %v772_v21 = vmul.f32 1.442695, %v725_v15  ;;  %v2438_v22 = vadd.f32 %v2437_v18, %v2436_v7  ;;  %v648_v23 = vadd.f32 %v647_v3, %v487_v16 }
 0x12a   :  { %v2439_v24 = vpop.f32.mrf.mxu0  ;;  %v873_v25 = vpack.c.bf16 %v2774_v19, %v2770_v14  ;;  %v3580_v19 = vpop.f32.mrf.mxu1 }
 0x12b   :  { %2787 = vrcp.f32 %v817_v20  ;;  %v490_v27 = vadd.f32 %v2438_v22, %v3542_v43  ;;  %v726_v28 = vsub.f32 0.0, %v648_v23 }
 0x12c   :  { %2789 = vpow2.f32 %v772_v21  ;;  %2600 = vmatmul.mubr.msk.bf16.gmra.mxu1 %vm905_vm3, %v873_v25  ;;  %v2440_v29 = vpop.f32.mrf.mxu0  ;;  %v2776_v30 = vpop.eup %2775 }
 0x12d   :  { %v774_v31 = vmul.f32 1.442695, %v726_v28  ;;  %v2441_v32 = vadd.f32 %v2440_v29, %v2439_v24  ;;  %v651_v33 = vadd.f32 %v650_v26, %v490_v27  ;;  %v818_v34 = vadd.f32 1.0, %v2776_v30  ;;  %v2778_v37 = vpop.eup %2777 }
 0x12e   :  { %v2442_v35 = vpop.f32.mrf.mxu0 }
 0x12f   :  { %2791 = vpow2.f32 %v774_v31  ;;  %v495_v38 = vadd.f32 %v2441_v32, %v3542_v43  ;;  %v727_v39 = vsub.f32 0.0, %v651_v33  ;;  %v679_v32 = vpop.f32.mrf.mxu1 }
 0x130   :  { %v2780_v40 = vpop.eup %2779  ;;  %v2443_v41 = vpop.f32.mrf.mxu0  ;;  %2793 = vrcp.f32 %v818_v34 }
 0x131   :  { %v2782_v42 = vpop.eup %2781  ;;  %v656_v44 = vadd.f32 %v3562_v54, %v495_v38  ;;  %v776_v45 = vmul.f32 1.442695, %v727_v39  ;;  %v2444_v46 = vadd.f32 %v2443_v41, %v2442_v35  ;;  %v874_v47 = vpack.c.bf16 %v2780_v40, %v2778_v37 }
 0x132   :  { %v819_v48 = vadd.f32 1.0, %v2782_v42  ;;  %v2445_v49 = vpop.f32.mrf.mxu0  ;;  %v2586_v42 = vpop.f32.mrf.mxu1 }
 0x133   :  { %v728_v51 = vsub.f32 0.0, %v656_v44  ;;  %2795 = vpow2.f32 %v776_v45  ;;  %v498_v52 = vadd.f32 %v2444_v46, %v3542_v43  ;;  %2603 = vmatprep.mubr.msk.bf16.mxu1 %vm905_vm3, %v874_v47 }
 0x134   :  { %2797 = vrcp.f32 %v819_v48  ;;  %v2446_v53 = vpop.f32.mrf.mxu0  ;;  %v2784_v55 = vpop.eup %2783 }
 0x135   :  { %v778_v56 = vmul.f32 1.442695, %v728_v51  ;;  %v659_v57 = vadd.f32 %v2578_v13, %v498_v52  ;;  %v2447_v58 = vadd.f32 %v2446_v53, %v2445_v49  ;;  %v820_v54 = vadd.f32 1.0, %v2784_v55  ;;  %v2786_v61 = vpop.eup %2785 }
 0x136   :  { %v2448_v59 = vpop.f32.mrf.mxu0 }
 0x137   :  { %2799 = vpow2.f32 %v778_v56  ;;  %v729_v62 = vsub.f32 0.0, %v659_v57  ;;  %v503_v63 = vadd.f32 %v2447_v58, %v3542_v43  ;;  %v682_v57 = vpop.f32.mrf.mxu1 }
 0x138   :  { %v2788_v0 = vpop.eup %2787  ;;  %v2449_v1 = vpop.f32.mrf.mxu0  ;;  %2801 = vrcp.f32 %v820_v54 }
 0x139   :  { %v2790_v2 = vpop.eup %2789  ;;  %v780_v3 = vmul.f32 1.442695, %v729_v62  ;;  %v2450_v4 = vadd.f32 %v2449_v1, %v2448_v59  ;;  %v664_v5 = vadd.f32 %v663_v50, %v503_v63  ;;  %v875_v6 = vpack.c.bf16 %v2788_v0, %v2786_v61 }
 0x13a   :  { %v821_v8 = vadd.f32 1.0, %v2790_v2  ;;  %v2451_v9 = vpop.f32.mrf.mxu0  ;;  %v3589_v2 = vpop.f32.mrf.mxu1 }
 0x13b   :  { %2803 = vpow2.f32 %v780_v3  ;;  %v730_v11 = vsub.f32 0.0, %v664_v5  ;;  %2604 = vmatmul.mubr.msk.bf16.gmra.mxu1 %vm905_vm3, %v875_v6  ;;  %v506_v12 = vadd.f32 %v2450_v4, %v3542_v43 }
 0x13c   :  { %v2792_v7 = vpop.eup %2791  ;;  %2805 = vrcp.f32 %v821_v8  ;;  %v2452_v13 = vpop.f32.mrf.mxu0 }
 0x13d   :  { %v782_v14 = vmul.f32 1.442695, %v730_v11  ;;  %v2453_v15 = vadd.f32 %v2452_v13, %v2451_v9  ;;  %v667_v16 = vadd.f32 %v666_v10, %v506_v12  ;;  %v822_v17 = vadd.f32 1.0, %v2792_v7  ;;  %v2794_v20 = vpop.eup %2793 }
 0x13e   :  { %v2454_v18 = vpop.f32.mrf.mxu0 }
 0x13f   :  { %v511_v21 = vadd.f32 %v2453_v15, %v3542_v43  ;;  %v731_v22 = vsub.f32 0.0, %v667_v16  ;;  %2807 = vpow2.f32 %v782_v14  ;;  %v695_v15 = vpop.f32.mrf.mxu1 }
 0x140   :  { %v2796_v23 = vpop.eup %2795  ;;  %v2455_v24 = vpop.f32.mrf.mxu0  ;;  %2809 = vrcp.f32 %v822_v17 }
 0x141   :  { %v2798_v25 = vpop.eup %2797  ;;  %v823_v26 = vadd.f32 1.0, %v2796_v23  ;;  %v672_v27 = vadd.f32 %v3571_v36, %v511_v21  ;;  %v784_v28 = vmul.f32 1.442695, %v731_v22  ;;  %v2456_v29 = vadd.f32 %v2455_v24, %v2454_v18 }
 0x142   :  { %v2457_v30 = vpop.f32.mrf.mxu0  ;;  %v876_v31 = vpack.c.bf16 %v2798_v25, %v2794_v20  ;;  %v2590_v25 = vpop.f32.mrf.mxu1 }
 0x143   :  { %2811 = vrcp.f32 %v823_v26  ;;  %v732_v33 = vsub.f32 0.0, %v672_v27  ;;  %v514_v34 = vadd.f32 %v2456_v29, %v3542_v43 }
 0x144   :  { %v2800_v35 = vpop.eup %2799  ;;  %2813 = vpow2.f32 %v784_v28  ;;  %2607 = vmatprep.mubr.msk.bf16.mxu1 %vm905_vm3, %v876_v31  ;;  %v2458_v37 = vpop.f32.mrf.mxu0 }
 0x145   :  { %v786_v38 = vmul.f32 1.442695, %v732_v33  ;;  %v675_v39 = vadd.f32 %v2582_v60, %v514_v34  ;;  %v2459_v40 = vadd.f32 %v2458_v37, %v2457_v30  ;;  %v824_v41 = vadd.f32 1.0, %v2800_v35  ;;  %v2802_v44 = vpop.eup %2801 }
 0x146   :  { %v2460_v36 = vpop.f32.mrf.mxu0 }
 0x147   :  { %v733_v45 = vsub.f32 0.0, %v675_v39  ;;  %v519_v46 = vadd.f32 %v2459_v40, %v3542_v43  ;;  %2815 = vpow2.f32 %v786_v38  ;;  %v698_v39 = vpop.f32.mrf.mxu1 }
 0x148   :  { %v2804_v47 = vpop.eup %2803  ;;  %v2461_v48 = vpop.f32.mrf.mxu0  ;;  %2817 = vrcp.f32 %v824_v41 }
 0x149   :  { %v2806_v49 = vpop.eup %2805  ;;  %v825_v50 = vadd.f32 1.0, %v2804_v47  ;;  %v788_v51 = vmul.f32 1.442695, %v733_v45  ;;  %v2462_v52 = vadd.f32 %v2461_v48, %v2460_v36  ;;  %v680_v53 = vadd.f32 %v679_v32, %v519_v46 }
 0x14a   :  { %v2463_v55 = vpop.f32.mrf.mxu0  ;;  %v877_v56 = vpack.c.bf16 %v2806_v49, %v2802_v44 }
 0x14b   :  { %2819 = vrcp.f32 %v825_v50  ;;  %v734_v58 = vsub.f32 0.0, %v680_v53  ;;  %v522_v54 = vadd.f32 %v2462_v52, %v3542_v43 }
 0x14c   :  { %2821 = vpow2.f32 %v788_v51  ;;  %2608 = vmatmul.mubr.msk.bf16.gmra.mxu1 %vm905_vm3, %v877_v56  ;;  %v2464_v59 = vpop.f32.mrf.mxu0  ;;  %v2808_v60 = vpop.eup %2807 }
 0x14d   :  { %v790_v61 = vmul.f32 1.442695, %v734_v58  ;;  %v2465_v62 = vadd.f32 %v2464_v59, %v2463_v55  ;;  %v683_v63 = vadd.f32 %v682_v57, %v522_v54  ;;  %v826_v0 = vadd.f32 1.0, %v2808_v60  ;;  %v2810_v3 = vpop.eup %2809 }
 0x14e   :  { %v2466_v1 = vpop.f32.mrf.mxu0 }
 0x14f   :  { %2823 = vpow2.f32 %v790_v61  ;;  %v527_v4 = vadd.f32 %v2465_v62, %v3542_v43  ;;  %v735_v5 = vsub.f32 0.0, %v683_v63 }
 0x150   :  { %v2812_v6 = vpop.eup %2811  ;;  %v2467_v8 = vpop.f32.mrf.mxu0  ;;  %2825 = vrcp.f32 %v826_v0 }
 0x151   :  { %v2814_v9 = vpop.eup %2813  ;;  %v688_v10 = vadd.f32 %v3580_v19, %v527_v4  ;;  %v792_v11 = vmul.f32 1.442695, %v735_v5  ;;  %v2468_v12 = vadd.f32 %v2467_v8, %v2466_v1  ;;  %v878_v7 = vpack.c.bf16 %v2812_v6, %v2810_v3 }
 0x152   :  { %v827_v13 = vadd.f32 1.0, %v2814_v9  ;;  %v2469_v14 = vpop.f32.mrf.mxu0 }
 0x153   :  { %v736_v16 = vsub.f32 0.0, %v688_v10  ;;  %2827 = vpow2.f32 %v792_v11  ;;  %v530_v17 = vadd.f32 %v2468_v12, %v3542_v43  ;;  %2611 = vmatprep.mubr.msk.bf16.mxu1 %vm905_vm3, %v878_v7 }
 0x154   :  { %2829 = vrcp.f32 %v827_v13  ;;  %v2470_v18 = vpop.f32.mrf.mxu0  ;;  %v2816_v20 = vpop.eup %2815 }
 0x155   :  { %v794_v21 = vmul.f32 1.442695, %v736_v16  ;;  %v691_v22 = vadd.f32 %v2586_v42, %v530_v17  ;;  %v2471_v23 = vadd.f32 %v2470_v18, %v2469_v14  ;;  %v828_v19 = vadd.f32 1.0, %v2816_v20  ;;  %v2818_v26 = vpop.eup %2817 }
 0x156   :  { %v2472_v24 = vpop.f32.mrf.mxu0 }
 0x157   :  { %2831 = vpow2.f32 %v794_v21  ;;  %v737_v27 = vsub.f32 0.0, %v691_v22  ;;  %v535_v28 = vadd.f32 %v2471_v23, %v3542_v43 }
 0x158   :  { %v2820_v29 = vpop.eup %2819  ;;  %v2473_v30 = vpop.f32.mrf.mxu0  ;;  %2833 = vrcp.f32 %v828_v19 }
 0x159   :  { %v2822_v31 = vpop.eup %2821  ;;  %v796_v32 = vmul.f32 1.442695, %v737_v27  ;;  %v2474_v33 = vadd.f32 %v2473_v30, %v2472_v24  ;;  %v696_v34 = vadd.f32 %v695_v15, %v535_v28  ;;  %v879_v35 = vpack.c.bf16 %v2820_v29, %v2818_v26  ;;  %v3613_v30 = vld [vmem:[%s4252_s4] ss:$0 sm:$0xff] }
 0x15a   :  { %v829_v37 = vadd.f32 1.0, %v2822_v31  ;;  %v2475_v38 = vpop.f32.mrf.mxu0 }
 0x15b   :  { %2835 = vpow2.f32 %v796_v32  ;;  %v738_v40 = vsub.f32 0.0, %v696_v34  ;;  %2612 = vmatmul.mubr.msk.bf16.gmra.mxu1 %vm905_vm3, %v879_v35  ;;  %v538_v41 = vadd.f32 %v2474_v33, %v3542_v43 }
 0x15c   :  { %v2824_v36 = vpop.eup %2823  ;;  %2837 = vrcp.f32 %v829_v37  ;;  %v2476_v42 = vpop.f32.mrf.mxu0 }
 0x15d   :  { %v798_v44 = vmul.f32 1.442695, %v738_v40  ;;  %v2477_v45 = vadd.f32 %v2476_v42, %v2475_v38  ;;  %v699_v46 = vadd.f32 %v698_v39, %v538_v41  ;;  %v830_v47 = vadd.f32 1.0, %v2824_v36  ;;  %v2826_v49 = vpop.eup %2825 }
 0x15e   :  { %v2478_v48 = vpop.f32.mrf.mxu0 }
 0x15f   :  { %v543_v50 = vadd.f32 %v2477_v45, %v3542_v43  ;;  %v739_v51 = vsub.f32 0.0, %v699_v46  ;;  %2839 = vpow2.f32 %v798_v44 }
 0x160   :  { %v2828_v52 = vpop.eup %2827  ;;  %v2479_v53 = vpop.f32.mrf.mxu0  ;;  %2841 = vrcp.f32 %v830_v47 }
 0x161   :  { %v2830_v55 = vpop.eup %2829  ;;  %v831_v56 = vadd.f32 1.0, %v2828_v52  ;;  %v704_v57 = vadd.f32 %v3589_v2, %v543_v50  ;;  %v800_v58 = vmul.f32 1.442695, %v739_v51  ;;  %v2480_v54 = vadd.f32 %v2479_v53, %v2478_v48 }
 0x162   :  { %v880_v59 = vpack.c.bf16 %v2830_v55, %v2826_v49 }
 0x163   :  { %2843 = vrcp.f32 %v831_v56  ;;  %v740_v60 = vsub.f32 0.0, %v704_v57  ;;  %v546_v61 = vadd.f32 %v2480_v54, %v3542_v43 }
 0x164   :  { %v2832_v62 = vpop.eup %2831  ;;  %2845 = vpow2.f32 %v800_v58  ;;  %2615 = vmatprep.mubr.msk.bf16.mxu1 %vm905_vm3, %v880_v59 }
 0x165   :  { %v802_v63 = vmul.f32 1.442695, %v740_v60  ;;  %v707_v0 = vadd.f32 %v2590_v25, %v546_v61  ;;  %v832_v1 = vadd.f32 1.0, %v2832_v62  ;;  %v2834_v3 = vpop.eup %2833  ;;  %v2727_v25 = vld [vmem:[%s4251_s5] sm:$0x1f]  }
 0x166   :  { %2703 = vmatprep.subr.msk.bf16.mxu1 %vm1358_vm4, %v2727_v25  ;;  %v1360_v26 = vsel %vm1358_vm4, %v2727_v25, 0 }
 0x167   :  { %v741_v4 = vsub.f32 0.0, %v707_v0  ;;  %2847 = vpow2.f32 %v802_v63  ;;  %2628 = vmatpush3.bf16.msra.mxu1 %v1360_v26 }
 0x168   :  { %v2836_v5 = vpop.eup %2835  ;;  %2849 = vrcp.f32 %v832_v1 }
 0x169   :  { %v2838_v2 = vpop.eup %2837  ;;  %v833_v6 = vadd.f32 1.0, %v2836_v5  ;;  %v804_v8 = vmul.f32 1.442695, %v741_v4 }
 0x16a   :  { %v881_v9 = vpack.c.bf16 %v2838_v2, %v2834_v3 }
 0x16b   :  { %2851 = vrcp.f32 %v833_v6 }
 0x16c   :  { %2853 = vpow2.f32 %v804_v8  ;;  %2616 = vmatmul.mubr.msk.bf16.gmra.mxu1 %vm905_vm3, %v881_v9  ;;  %v2840_v43 = vpop.eup %2839 }
 0x16d   :  { %v2842_v10 = vpop.eup %2841  ;;  %v834_v11 = vadd.f32 1.0, %v2840_v43  ;;  %v1703_v43 = vld [vmem:[%s4253_s7 + $0x18] sm:$0x33] }
 0x16f   :  { %2855 = vrcp.f32 %v834_v11  ;;  %v2334_v11 = vcombine.high %v1703_v43, %v1703_v43 }
 0x170   :  { %v2844_v12 = vpop.eup %2843 }
 0x171   :  { %v2846_v7 = vpop.eup %2845  ;;  %v882_v13 = vpack.c.bf16 %v2844_v12, %v2842_v10  ;;  %v2333_v12 = vcombine.low %v1703_v43, %v1703_v43  ;;  %2336 = vmatprep.subr.msk.bf16.mxu0 %vm954_vm2, %v2334_v11  ;;  %2697 = vmatprep.subr.msk.bf16.mxu1 %vm954_vm2, %v2334_v11 }
 0x172   :  { %v835_v14 = vadd.f32 1.0, %v2846_v7 }
 0x173   :  { %2619 = vmatprep.mubr.msk.bf16.mxu1 %vm905_vm3, %v882_v13 }
 0x174   :  { %2857 = vrcp.f32 %v835_v14  ;;  %v2848_v15 = vpop.eup %2847 }
 0x175   :  { %v2850_v16 = vpop.eup %2849  ;;  %v836_v17 = vadd.f32 1.0, %v2848_v15  ;;  %v1795_v15 = vsel %vm954_vm2, %v2333_v12, 0 }
 0x176   :  { %1816 = vmatpush1.bf16.msra.mxu0 %v1795_v15 }
 0x177   :  { %2859 = vrcp.f32 %v836_v17 }
 0x178   :  { %v2852_v18 = vpop.eup %2851 }
 0x179   :  { %v2854_v20 = vpop.eup %2853  ;;  %v883_v21 = vpack.c.bf16 %v2852_v18, %v2850_v16 }
 0x17a   :  { %v837_v22 = vadd.f32 1.0, %v2854_v20 }
 0x17b   :  { %2620 = vmatmul.mubr.msk.bf16.gmra.mxu1 %vm905_vm3, %v883_v21 }
 0x17c   :  { %2861 = vrcp.f32 %v837_v22  ;;  %v2856_v23 = vpop.eup %2855 }
 0x181   :  { %v2858_v19 = vpop.eup %2857 }
 0x182   :  { %v884_v24 = vpack.c.bf16 %v2858_v19, %v2856_v23 }
 0x184   :  { %2623 = vmatprep.mubr.msk.bf16.mxu1 %vm905_vm3, %v884_v24  ;;  %v2860_v27 = vpop.eup %2859 }
 0x189   :  { %v2862_v28 = vpop.eup %2861 }
 0x18a   :  { %v885_v29 = vpack.c.bf16 %v2862_v28, %v2860_v27 }
 0x18c   :  { %2624 = vmatmul.mubr.msk.bf16.gmra.mxu1 %vm905_vm3, %v885_v29 }
 0x1db   :  { %v2597_v31 = vpop.f32.mrf.mxu1 }
 0x1dc   :  { %v1001_v32 = vadd.f32 %v2597_v31, %v3613_v30 }
 0x1dd   :  { %v992_v33 = vpop.f32.mrf.mxu1 }
 0x1de   :  { %v1121_v34 = vsub.f32 0.0, %v1001_v32  ;;  %v993_v35 = vadd.f32 %v3613_v30, %v992_v33 }
 0x1df   :  { %v2598_v37 = vpop.f32.mrf.mxu1 }
 0x1e0   :  { %v1155_v38 = vmul.f32 1.442695, %v1121_v34  ;;  %v1119_v39 = vsub.f32 0.0, %v993_v35  ;;  %v1004_v40 = vadd.f32 %v2598_v37, %v3613_v30 }
 0x1e1   :  { %v995_v41 = vpop.f32.mrf.mxu1 }
 0x1e2   :  { %2863 = vpow2.f32 %v1155_v38  ;;  %v1151_v36 = vmul.f32 1.442695, %v1119_v39  ;;  %v1122_v42 = vsub.f32 0.0, %v1004_v40  ;;  %v996_v44 = vadd.f32 %v3613_v30, %v995_v41 }
 0x1e4   :  { %2865 = vpow2.f32 %v1151_v36  ;;  %v1157_v45 = vmul.f32 1.442695, %v1122_v42  ;;  %v1120_v46 = vsub.f32 0.0, %v996_v44 }
 0x1e6   :  { %2867 = vpow2.f32 %v1157_v45  ;;  %v1153_v47 = vmul.f32 1.442695, %v1120_v46 }
 0x1e8   :  { %2869 = vpow2.f32 %v1153_v47 }
 0x1ec   :  { %v2601_v48 = vpop.f32.mrf.mxu1 }
 0x1ed   :  { %v1017_v49 = vadd.f32 %v2601_v48, %v3613_v30 }
 0x1ee   :  { %v1008_v50 = vpop.f32.mrf.mxu1 }
 0x1ef   :  { %v2864_v51 = vpop.eup %2863  ;;  %v1125_v52 = vsub.f32 0.0, %v1017_v49  ;;  %v1009_v53 = vadd.f32 %v3613_v30, %v1008_v50 }
 0x1f0   :  { %v1217_v55 = vadd.f32 1.0, %v2864_v51  ;;  %v2602_v56 = vpop.f32.mrf.mxu1 }
 0x1f1   :  { %v2866_v57 = vpop.eup %2865  ;;  %v1163_v58 = vmul.f32 1.442695, %v1125_v52  ;;  %v1123_v54 = vsub.f32 0.0, %v1009_v53  ;;  %v1020_v59 = vadd.f32 %v2602_v56, %v3613_v30 }
 0x1f2   :  { %2871 = vrcp.f32 %v1217_v55  ;;  %v1215_v60 = vadd.f32 1.0, %v2866_v57  ;;  %v1011_v61 = vpop.f32.mrf.mxu1 }
 0x1f3   :  { %v2868_v62 = vpop.eup %2867  ;;  %2873 = vpow2.f32 %v1163_v58  ;;  %v1159_v63 = vmul.f32 1.442695, %v1123_v54  ;;  %v1126_v0 = vsub.f32 0.0, %v1020_v59  ;;  %v1012_v1 = vadd.f32 %v3613_v30, %v1011_v61 }
 0x1f4   :  { %2875 = vrcp.f32 %v1215_v60  ;;  %v1218_v3 = vadd.f32 1.0, %v2868_v62 }
 0x1f5   :  { %v2870_v4 = vpop.eup %2869  ;;  %2877 = vpow2.f32 %v1159_v63  ;;  %v1165_v5 = vmul.f32 1.442695, %v1126_v0  ;;  %v1124_v2 = vsub.f32 0.0, %v1012_v1 }
 0x1f6   :  { %2879 = vrcp.f32 %v1218_v3  ;;  %v1216_v6 = vadd.f32 1.0, %v2870_v4 }
 0x1f7   :  { %2881 = vpow2.f32 %v1165_v5  ;;  %v1161_v8 = vmul.f32 1.442695, %v1124_v2 }
 0x1f8   :  { %2883 = vrcp.f32 %v1216_v6 }
 0x1f9   :  { %2885 = vpow2.f32 %v1161_v8 }
 0x1fb   :  { %v2605_v9 = vpop.f32.mrf.mxu1 }
 0x1fc   :  { %v1033_v10 = vadd.f32 %v2605_v9, %v3613_v30 }
 0x1fd   :  { %v1024_v7 = vpop.f32.mrf.mxu1 }
 0x1fe   :  { %v1129_v13 = vsub.f32 0.0, %v1033_v10  ;;  %v1025_v14 = vadd.f32 %v3613_v30, %v1024_v7 }
 0x1ff   :  { %v2872_v16 = vpop.eup %2871  ;;  %v2606_v17 = vpop.f32.mrf.mxu1 }
 0x200   :  { %v2874_v18 = vpop.eup %2873  ;;  %v1171_v20 = vmul.f32 1.442695, %v1129_v13  ;;  %v1127_v21 = vsub.f32 0.0, %v1025_v14  ;;  %v1036_v22 = vadd.f32 %v2606_v17, %v3613_v30 }
 0x201   :  { %v2876_v23 = vpop.eup %2875  ;;  %v1027_v19 = vpop.f32.mrf.mxu1  ;;  %v1221_v38 = vadd.f32 1.0, %v2874_v18 }
 0x202   :  { %v2878_v24 = vpop.eup %2877  ;;  %2887 = vpow2.f32 %v1171_v20  ;;  %v1167_v25 = vmul.f32 1.442695, %v1127_v21  ;;  %v1130_v26 = vsub.f32 0.0, %v1036_v22  ;;  %v1028_v27 = vadd.f32 %v3613_v30, %v1027_v19 }
 0x203   :  { %v2880_v28 = vpop.eup %2879  ;;  %v1219_v29 = vadd.f32 1.0, %v2878_v24 }
 0x204   :  { %v2882_v31 = vpop.eup %2881  ;;  %2889 = vpow2.f32 %v1167_v25  ;;  %v1173_v32 = vmul.f32 1.442695, %v1130_v26  ;;  %v1128_v33 = vsub.f32 0.0, %v1028_v27  ;;  %v1280_v36 = vpack.c.bf16 %v2880_v28, %v2872_v16 }
 0x205   :  { %v2884_v34 = vpop.eup %2883  ;;  %2891 = vrcp.f32 %v1219_v29  ;;  %v1222_v35 = vadd.f32 1.0, %v2882_v31 }
 0x206   :  { %v2886_v37 = vpop.eup %2885  ;;  %2893 = vpow2.f32 %v1173_v32  ;;  %v1169_v39 = vmul.f32 1.442695, %v1128_v33  ;;  %v1279_v40 = vpack.c.bf16 %v2884_v34, %v2876_v23 }
 0x207   :  { %2895 = vrcp.f32 %v1222_v35  ;;  %v1220_v41 = vadd.f32 1.0, %v2886_v37 }
 0x208   :  { %2897 = vpow2.f32 %v1169_v39  ;;  %2629 = vmatprep.mubr.msk.bf16.mxu1 %vm1309_vm5, %v1279_v40 }
 0x209   :  { %2899 = vrcp.f32 %v1220_v41  ;;  %2630 = vmatmul.mubr.msk.bf16.vlgmr.msra.gmra.mxu1 %vm1309_vm5, %v1280_v36 }
 0x20a   :  { %2901 = vrcp.f32 %v1221_v38  ;;  %2699 = vmatpush1.bf16.msra.mxu1 %v1795_v15 }
 0x20c   :  { %v2609_v42 = vpop.f32.mrf.mxu1 }
 0x20d   :  { %v1049_v44 = vadd.f32 %v2609_v42, %v3613_v30 }
 0x20e   :  { %v1040_v45 = vpop.f32.mrf.mxu1 }
 0x20f   :  { %v2888_v46 = vpop.eup %2887  ;;  %v1133_v47 = vsub.f32 0.0, %v1049_v44  ;;  %v1041_v48 = vadd.f32 %v3613_v30, %v1040_v45 }
 0x210   :  { %v1225_v49 = vadd.f32 1.0, %v2888_v46  ;;  %v2610_v50 = vpop.f32.mrf.mxu1 }
 0x211   :  { %v2890_v51 = vpop.eup %2889  ;;  %v1179_v52 = vmul.f32 1.442695, %v1133_v47  ;;  %v1131_v53 = vsub.f32 0.0, %v1041_v48  ;;  %v1052_v55 = vadd.f32 %v2610_v50, %v3613_v30 }
 0x212   :  { %v2892_v56 = vpop.eup %2891  ;;  %2903 = vrcp.f32 %v1225_v49  ;;  %v1223_v57 = vadd.f32 1.0, %v2890_v51  ;;  %v1043_v58 = vpop.f32.mrf.mxu1 }
 0x213   :  { %v2894_v54 = vpop.eup %2893  ;;  %2905 = vpow2.f32 %v1179_v52  ;;  %v1175_v59 = vmul.f32 1.442695, %v1131_v53  ;;  %v1134_v60 = vsub.f32 0.0, %v1052_v55  ;;  %v1044_v61 = vadd.f32 %v3613_v30, %v1043_v58 }
 0x214   :  { %v2896_v62 = vpop.eup %2895  ;;  %2907 = vrcp.f32 %v1223_v57  ;;  %v1226_v63 = vadd.f32 1.0, %v2894_v54 }
 0x215   :  { %v2898_v0 = vpop.eup %2897  ;;  %2909 = vpow2.f32 %v1175_v59  ;;  %v1181_v1 = vmul.f32 1.442695, %v1134_v60  ;;  %v1132_v3 = vsub.f32 0.0, %v1044_v61 }
 0x216   :  { %v2900_v4 = vpop.eup %2899  ;;  %2911 = vrcp.f32 %v1226_v63  ;;  %v1224_v5 = vadd.f32 1.0, %v2898_v0 }
 0x217   :  { %v2902_v2 = vpop.eup %2901  ;;  %2913 = vpow2.f32 %v1181_v1  ;;  %v1177_v6 = vmul.f32 1.442695, %v1132_v3  ;;  %v1281_v8 = vpack.c.bf16 %v2900_v4, %v2892_v56 }
 0x218   :  { %2915 = vrcp.f32 %v1224_v5  ;;  %v1282_v9 = vpack.c.bf16 %v2896_v62, %v2902_v2 }
 0x219   :  { %2917 = vpow2.f32 %v1177_v6  ;;  %2633 = vmatprep.mubr.msk.bf16.mxu1 %vm1309_vm5, %v1281_v8 }
 0x21a   :  { %2634 = vmatmul.mubr.msk.bf16.gmra.mxu1 %vm1309_vm5, %v1282_v9 }
 0x21b   :  { %v2613_v43 = vpop.f32.mrf.mxu1 }
 0x21c   :  { %v1065_v10 = vadd.f32 %v2613_v43, %v3613_v30 }
 0x21d   :  { %v1056_v11 = vpop.f32.mrf.mxu1 }
 0x21e   :  { %v1137_v12 = vsub.f32 0.0, %v1065_v10  ;;  %v1057_v7 = vadd.f32 %v3613_v30, %v1056_v11 }
 0x21f   :  { %v2904_v13 = vpop.eup %2903  ;;  %v2614_v14 = vpop.f32.mrf.mxu1 }
 0x220   :  { %v2906_v15 = vpop.eup %2905  ;;  %v1187_v16 = vmul.f32 1.442695, %v1137_v12  ;;  %v1135_v17 = vsub.f32 0.0, %v1057_v7  ;;  %v1068_v18 = vadd.f32 %v2614_v14, %v3613_v30 }
 0x221   :  { %v2908_v20 = vpop.eup %2907  ;;  %v1059_v21 = vpop.f32.mrf.mxu1  ;;  %v1229_v34 = vadd.f32 1.0, %v2906_v15 }
 0x222   :  { %v2910_v22 = vpop.eup %2909  ;;  %2919 = vpow2.f32 %v1187_v16  ;;  %v1183_v23 = vmul.f32 1.442695, %v1135_v17  ;;  %v1138_v19 = vsub.f32 0.0, %v1068_v18  ;;  %v1060_v24 = vadd.f32 %v3613_v30, %v1059_v21 }
 0x223   :  { %v2912_v25 = vpop.eup %2911  ;;  %v1227_v26 = vadd.f32 1.0, %v2910_v22 }
 0x224   :  { %v2914_v27 = vpop.eup %2913  ;;  %2921 = vpow2.f32 %v1183_v23  ;;  %v1189_v28 = vmul.f32 1.442695, %v1138_v19  ;;  %v1136_v29 = vsub.f32 0.0, %v1060_v24  ;;  %v1284_v39 = vpack.c.bf16 %v2912_v25, %v2904_v13 }
 0x225   :  { %v2916_v31 = vpop.eup %2915  ;;  %2923 = vrcp.f32 %v1227_v26  ;;  %v1230_v32 = vadd.f32 1.0, %v2914_v27 }
 0x226   :  { %v2918_v33 = vpop.eup %2917  ;;  %2925 = vpow2.f32 %v1189_v28  ;;  %v1185_v35 = vmul.f32 1.442695, %v1136_v29  ;;  %v1283_v37 = vpack.c.bf16 %v2916_v31, %v2908_v20 }
 0x227   :  { %2927 = vrcp.f32 %v1230_v32  ;;  %v1228_v38 = vadd.f32 1.0, %v2918_v33 }
 0x228   :  { %2929 = vpow2.f32 %v1185_v35  ;;  %2637 = vmatprep.mubr.msk.bf16.mxu1 %vm1309_vm5, %v1283_v37 }
 0x229   :  { %2931 = vrcp.f32 %v1228_v38  ;;  %2638 = vmatmul.mubr.msk.bf16.gmra.mxu1 %vm1309_vm5, %v1284_v39 }
 0x22a   :  { %2933 = vrcp.f32 %v1229_v34 }
 0x22c   :  { %v2617_v40 = vpop.f32.mrf.mxu1 }
 0x22d   :  { %v1081_v41 = vadd.f32 %v2617_v40, %v3613_v30 }
 0x22e   :  { %v1072_v36 = vpop.f32.mrf.mxu1 }
 0x22f   :  { %v2920_v42 = vpop.eup %2919  ;;  %v1141_v44 = vsub.f32 0.0, %v1081_v41  ;;  %v1073_v45 = vadd.f32 %v3613_v30, %v1072_v36 }
 0x230   :  { %v1233_v46 = vadd.f32 1.0, %v2920_v42  ;;  %v2618_v47 = vpop.f32.mrf.mxu1 }
 0x231   :  { %v2922_v48 = vpop.eup %2921  ;;  %v1195_v49 = vmul.f32 1.442695, %v1141_v44  ;;  %v1139_v50 = vsub.f32 0.0, %v1073_v45  ;;  %v1084_v51 = vadd.f32 %v2618_v47, %v3613_v30 }
 0x232   :  { %v2924_v52 = vpop.eup %2923  ;;  %2935 = vrcp.f32 %v1233_v46  ;;  %v1231_v53 = vadd.f32 1.0, %v2922_v48  ;;  %v1075_v55 = vpop.f32.mrf.mxu1 }
 0x233   :  { %v2926_v56 = vpop.eup %2925  ;;  %2937 = vpow2.f32 %v1195_v49  ;;  %v1191_v57 = vmul.f32 1.442695, %v1139_v50  ;;  %v1142_v58 = vsub.f32 0.0, %v1084_v51  ;;  %v1076_v54 = vadd.f32 %v3613_v30, %v1075_v55 }
 0x234   :  { %v2928_v59 = vpop.eup %2927  ;;  %2939 = vrcp.f32 %v1231_v53  ;;  %v1234_v60 = vadd.f32 1.0, %v2926_v56 }
 0x235   :  { %v2930_v61 = vpop.eup %2929  ;;  %2941 = vpow2.f32 %v1191_v57  ;;  %v1197_v62 = vmul.f32 1.442695, %v1142_v58  ;;  %v1140_v63 = vsub.f32 0.0, %v1076_v54 }
 0x236   :  { %v2932_v0 = vpop.eup %2931  ;;  %2943 = vrcp.f32 %v1234_v60  ;;  %v1232_v1 = vadd.f32 1.0, %v2930_v61 }
 0x237   :  { %v2934_v3 = vpop.eup %2933  ;;  %2945 = vpow2.f32 %v1197_v62  ;;  %v1193_v4 = vmul.f32 1.442695, %v1140_v63  ;;  %v1285_v5 = vpack.c.bf16 %v2932_v0, %v2924_v52 }
 0x238   :  { %2947 = vrcp.f32 %v1232_v1  ;;  %v1286_v2 = vpack.c.bf16 %v2928_v59, %v2934_v3 }
 0x239   :  { %2949 = vpow2.f32 %v1193_v4  ;;  %2641 = vmatprep.mubr.msk.bf16.mxu1 %vm1309_vm5, %v1285_v5 }
 0x23a   :  { %2642 = vmatmul.mubr.msk.bf16.gmra.mxu1 %vm1309_vm5, %v1286_v2 }
 0x23b   :  { %v2621_v6 = vpop.f32.mrf.mxu1 }
 0x23c   :  { %v1097_v8 = vadd.f32 %v2621_v6, %v3613_v30 }
 0x23d   :  { %v1088_v9 = vpop.f32.mrf.mxu1 }
 0x23e   :  { %v1145_v43 = vsub.f32 0.0, %v1097_v8  ;;  %v1089_v10 = vadd.f32 %v3613_v30, %v1088_v9 }
 0x23f   :  { %v2936_v11 = vpop.eup %2935  ;;  %v2622_v12 = vpop.f32.mrf.mxu1 }
 0x240   :  { %v2938_v7 = vpop.eup %2937  ;;  %v1203_v13 = vmul.f32 1.442695, %v1145_v43  ;;  %v1143_v14 = vsub.f32 0.0, %v1089_v10  ;;  %v1100_v15 = vadd.f32 %v2622_v12, %v3613_v30 }
 0x241   :  { %v2940_v16 = vpop.eup %2939  ;;  %v1091_v17 = vpop.f32.mrf.mxu1  ;;  %v1237_v31 = vadd.f32 1.0, %v2938_v7 }
 0x242   :  { %v2942_v18 = vpop.eup %2941  ;;  %2951 = vpow2.f32 %v1203_v13  ;;  %v1199_v20 = vmul.f32 1.442695, %v1143_v14  ;;  %v1146_v21 = vsub.f32 0.0, %v1100_v15  ;;  %v1092_v22 = vadd.f32 %v3613_v30, %v1091_v17  ;;  %v2732_v15 = vld [vmem:[%s4253_s7 + $0x4] ss:$12 sps:$4 sm:$0xff]  }
 0x243   :  { %v2944_v23 = vpop.eup %2943  ;;  %v1235_v19 = vadd.f32 1.0, %v2942_v18  ;;  %1817 = vmatprep.subr.bf16.mxu0 %v2732_v15  ;;  %2698 = vmatprep.subr.bf16.mxu1 %v2732_v15 }
 0x244   :  { %v2946_v24 = vpop.eup %2945  ;;  %2953 = vpow2.f32 %v1199_v20  ;;  %v1205_v25 = vmul.f32 1.442695, %v1146_v21  ;;  %v1144_v26 = vsub.f32 0.0, %v1092_v22  ;;  %v1288_v35 = vpack.c.bf16 %v2944_v23, %v2936_v11 }
 0x245   :  { %v2948_v27 = vpop.eup %2947  ;;  %2955 = vrcp.f32 %v1235_v19  ;;  %v1238_v28 = vadd.f32 1.0, %v2946_v24  ;;  %v3119_v21 = vmov 0  }
 0x246   :  { %v2950_v29 = vpop.eup %2949  ;;  %2957 = vpow2.f32 %v1205_v25  ;;  %v1201_v32 = vmul.f32 1.442695, %v1144_v26  ;;  %v1287_v33 = vpack.c.bf16 %v2948_v27, %v2940_v16  ;;  %v2730_v16 = vld [vmem:[%s4253_s7] ss:$12 sps:$4 sm:$0xff]   ;;  %1835 = vmatprep.mubr.bf16.mxu0 %v3119_v21 }
 0x247   :  { %2959 = vrcp.f32 %v1238_v28  ;;  %v1236_v34 = vadd.f32 1.0, %v2950_v29  ;;  %1818 = vmatpush1.bf16.msra.mxu0 %v2730_v16  ;;  %2700 = vmatpush1.bf16.msra.mxu1 %v2730_v16  ;;  %v3680_v25 = vld [vmem:[%s4254_s6] ss:$0 sm:$0xff] }
 0x248   :  { %2961 = vpow2.f32 %v1201_v32  ;;  %2645 = vmatprep.mubr.msk.bf16.mxu1 %vm1309_vm5, %v1287_v33 }
 0x249   :  { %2963 = vrcp.f32 %v1236_v34  ;;  %2646 = vmatmul.mubr.msk.bf16.gmra.mxu1 %vm1309_vm5, %v1288_v35 }
 0x24a   :  { %2965 = vrcp.f32 %v1237_v31 }
 0x24c   :  { %v2625_v37 = vpop.f32.mrf.mxu1 }
 0x24d   :  { %v1113_v38 = vadd.f32 %v2625_v37, %v3613_v30 }
 0x24e   :  { %v1104_v39 = vpop.f32.mrf.mxu1 }
 0x24f   :  { %v2952_v40 = vpop.eup %2951  ;;  %v1149_v41 = vsub.f32 0.0, %v1113_v38  ;;  %v1105_v36 = vadd.f32 %v3613_v30, %v1104_v39 }
 0x250   :  { %v1241_v42 = vadd.f32 1.0, %v2952_v40  ;;  %v2626_v44 = vpop.f32.mrf.mxu1 }
 0x251   :  { %v2954_v45 = vpop.eup %2953  ;;  %v1211_v46 = vmul.f32 1.442695, %v1149_v41  ;;  %v1147_v47 = vsub.f32 0.0, %v1105_v36  ;;  %v1116_v48 = vadd.f32 %v2626_v44, %v3613_v30 }
 0x252   :  { %v2956_v49 = vpop.eup %2955  ;;  %2967 = vrcp.f32 %v1241_v42  ;;  %v1239_v50 = vadd.f32 1.0, %v2954_v45  ;;  %v1107_v51 = vpop.f32.mrf.mxu1 }
 0x253   :  { %v2958_v52 = vpop.eup %2957  ;;  %2969 = vpow2.f32 %v1211_v46  ;;  %v1207_v53 = vmul.f32 1.442695, %v1147_v47  ;;  %v1150_v55 = vsub.f32 0.0, %v1116_v48  ;;  %v1108_v56 = vadd.f32 %v3613_v30, %v1107_v51  ;;  %v3692_v51 = vld [vmem:[%s4253_s7 + $0x20] ss:$0 sps:$4 sm:$0x33]  }
 0x254   :  { %v2960_v57 = vpop.eup %2959  ;;  %2971 = vrcp.f32 %v1239_v50  ;;  %v1242_v58 = vadd.f32 1.0, %v2958_v52  ;;  %2704 = vmatprep.subr.msk.bf16.mxu1 %vm954_vm2, %v3692_v51 }
 0x255   :  { %v2962_v54 = vpop.eup %2961  ;;  %2973 = vpow2.f32 %v1207_v53  ;;  %v1213_v59 = vmul.f32 1.442695, %v1150_v55  ;;  %v1148_v60 = vsub.f32 0.0, %v1108_v56 }
 0x256   :  { %v2964_v61 = vpop.eup %2963  ;;  %2975 = vrcp.f32 %v1242_v58  ;;  %v1240_v62 = vadd.f32 1.0, %v2962_v54 }
 0x257   :  { %v2966_v63 = vpop.eup %2965  ;;  %2977 = vpow2.f32 %v1213_v59  ;;  %v1209_v0 = vmul.f32 1.442695, %v1148_v60  ;;  %v1289_v1 = vpack.c.bf16 %v2964_v61, %v2956_v49 }
 0x258   :  { %2979 = vrcp.f32 %v1240_v62  ;;  %v1290_v3 = vpack.c.bf16 %v2960_v57, %v2966_v63 }
 0x259   :  { %2981 = vpow2.f32 %v1209_v0  ;;  %2649 = vmatprep.mubr.msk.bf16.mxu1 %vm1309_vm5, %v1289_v1 }
 0x25a   :  { %2650 = vmatmul.mubr.msk.bf16.gmra.mxu1 %vm1309_vm5, %v1290_v3 }
 0x25f   :  { %v2968_v30 = vpop.eup %2967 }
 0x260   :  { %v2970_v4 = vpop.eup %2969 }
 0x261   :  { %v2972_v5 = vpop.eup %2971  ;;  %v1245_v12 = vadd.f32 1.0, %v2970_v4 }
 0x262   :  { %v2974_v2 = vpop.eup %2973 }
 0x263   :  { %v2976_v6 = vpop.eup %2975  ;;  %v1243_v8 = vadd.f32 1.0, %v2974_v2 }
 0x264   :  { %v2978_v9 = vpop.eup %2977  ;;  %v1292_v14 = vpack.c.bf16 %v2976_v6, %v2968_v30 }
 0x265   :  { %v2980_v43 = vpop.eup %2979  ;;  %v1246_v10 = vadd.f32 1.0, %v2978_v9  ;;  %2983 = vrcp.f32 %v1243_v8 }
 0x266   :  { %v2982_v11 = vpop.eup %2981  ;;  %v1291_v7 = vpack.c.bf16 %v2980_v43, %v2972_v5 }
 0x267   :  { %v1244_v13 = vadd.f32 1.0, %v2982_v11  ;;  %2985 = vrcp.f32 %v1246_v10 }
 0x268   :  { %2653 = vmatprep.mubr.msk.bf16.mxu1 %vm1309_vm5, %v1291_v7 }
 0x269   :  { %2987 = vrcp.f32 %v1244_v13  ;;  %2654 = vmatmul.mubr.msk.bf16.gmra.mxu1 %vm1309_vm5, %v1292_v14 }
 0x26a   :  { %2989 = vrcp.f32 %v1245_v12 }
 0x272   :  { %v2984_v17 = vpop.eup %2983 }
 0x274   :  { %v2986_v18 = vpop.eup %2985 }
 0x276   :  { %v2988_v20 = vpop.eup %2987 }
 0x277   :  { %v2990_v22 = vpop.eup %2989  ;;  %v1293_v23 = vpack.c.bf16 %v2988_v20, %v2984_v17 }
 0x278   :  { %v1294_v19 = vpack.c.bf16 %v2986_v18, %v2990_v22 }
 0x279   :  { %2657 = vmatprep.mubr.msk.bf16.mxu1 %vm1309_vm5, %v1293_v23 }
 0x27a   :  { %2658 = vmatmul.mubr.msk.bf16.gmra.mxu1 %vm1309_vm5, %v1294_v19 }
 0x27b   :  { %1985 = vmatprep.mubr.bf16.mxu1 %v3119_v21 }
 0x2c9   :  { %v2631_v24 = vpop.f32.mrf.mxu1 }
 0x2ca   :  { %v1405_v29 = vadd.f32 %v2631_v24, %v3680_v25 }
 0x2cb   :  { %v1396_v26 = vpop.f32.mrf.mxu1 }
 0x2cc   :  { %v1397_v27 = vadd.f32 %v3680_v25, %v1396_v26  ;;  %v1525_v38 = vsub.f32 0.0, %v1405_v29 }
 0x2cd   :  { %v2632_v28 = vpop.f32.mrf.mxu1 }
 0x2ce   :  { %v1523_v31 = vsub.f32 0.0, %v1397_v27  ;;  %v1408_v32 = vadd.f32 %v2632_v28, %v3680_v25  ;;  %v1559_v36 = vmul.f32 1.442695, %v1525_v38 }
 0x2cf   :  { %v1399_v33 = vpop.f32.mrf.mxu1 }
 0x2d0   :  { %v1555_v34 = vmul.f32 1.442695, %v1523_v31  ;;  %v1526_v35 = vsub.f32 0.0, %v1408_v32  ;;  %v1400_v37 = vadd.f32 %v3680_v25, %v1399_v33 }
 0x2d2   :  { %2991 = vpow2.f32 %v1555_v34  ;;  %v1524_v39 = vsub.f32 0.0, %v1400_v37  ;;  %v1561_v40 = vmul.f32 1.442695, %v1526_v35 }
 0x2d4   :  { %v1557_v41 = vmul.f32 1.442695, %v1524_v39 }
 0x2d6   :  { %2993 = vpow2.f32 %v1557_v41 }
 0x2d7   :  { %2995 = vpow2.f32 %v1561_v40 }
 0x2d8   :  { %2997 = vpow2.f32 %v1559_v36 }
 0x2da   :  { %v2635_v42 = vpop.f32.mrf.mxu1 }
 0x2db   :  { %v1421_v48 = vadd.f32 %v2635_v42, %v3680_v25 }
 0x2dc   :  { %v1412_v44 = vpop.f32.mrf.mxu1 }
 0x2dd   :  { %v1413_v45 = vadd.f32 %v3680_v25, %v1412_v44  ;;  %v1529_v54 = vsub.f32 0.0, %v1421_v48 }
 0x2de   :  { %v2636_v46 = vpop.f32.mrf.mxu1 }
 0x2df   :  { %v2992_v47 = vpop.eup %2991  ;;  %v1527_v49 = vsub.f32 0.0, %v1413_v45  ;;  %v1424_v50 = vadd.f32 %v2636_v46, %v3680_v25  ;;  %v1567_v1 = vmul.f32 1.442695, %v1529_v54 }
 0x2e0   :  { %v1415_v52 = vpop.f32.mrf.mxu1  ;;  %v1619_v53 = vadd.f32 1.0, %v2992_v47 }
 0x2e1   :  { %v1563_v55 = vmul.f32 1.442695, %v1527_v49  ;;  %v1530_v56 = vsub.f32 0.0, %v1424_v50  ;;  %v1416_v57 = vadd.f32 %v3680_v25, %v1415_v52 }
 0x2e3   :  { %v2994_v58 = vpop.eup %2993  ;;  %2999 = vpow2.f32 %v1563_v55  ;;  %v1528_v59 = vsub.f32 0.0, %v1416_v57  ;;  %v1569_v62 = vmul.f32 1.442695, %v1530_v56 }
 0x2e4   :  { %v1620_v60 = vadd.f32 1.0, %v2994_v58  ;;  %v2996_v61 = vpop.eup %2995  ;;  %3001 = vrcp.f32 %v1619_v53 }
 0x2e5   :  { %v1565_v63 = vmul.f32 1.442695, %v1528_v59  ;;  %v2998_v0 = vpop.eup %2997  ;;  %v1622_v3 = vadd.f32 1.0, %v2996_v61 }
 0x2e6   :  { %3003 = vrcp.f32 %v1620_v60  ;;  %v1621_v4 = vadd.f32 1.0, %v2998_v0 }
 0x2e7   :  { %3005 = vpow2.f32 %v1565_v63 }
 0x2e8   :  { %3007 = vpow2.f32 %v1569_v62 }
 0x2e9   :  { %v2639_v30 = vpop.f32.mrf.mxu1  ;;  %3009 = vpow2.f32 %v1567_v1 }
 0x2ea   :  { %3011 = vrcp.f32 %v1622_v3  ;;  %v1437_v43 = vadd.f32 %v2639_v30, %v3680_v25 }
 0x2eb   :  { %v1428_v5 = vpop.f32.mrf.mxu1  ;;  %3013 = vrcp.f32 %v1621_v4 }
 0x2ec   :  { %v1429_v2 = vadd.f32 %v3680_v25, %v1428_v5  ;;  %v1533_v18 = vsub.f32 0.0, %v1437_v43 }
 0x2ed   :  { %v2640_v6 = vpop.f32.mrf.mxu1 }
 0x2ee   :  { %v1531_v8 = vsub.f32 0.0, %v1429_v2  ;;  %v1440_v9 = vadd.f32 %v2640_v6, %v3680_v25  ;;  %v1575_v27 = vmul.f32 1.442695, %v1533_v18 }
 0x2ef   :  { %v1431_v10 = vpop.f32.mrf.mxu1 }
 0x2f0   :  { %v3000_v11 = vpop.eup %2999  ;;  %v1571_v12 = vmul.f32 1.442695, %v1531_v8  ;;  %v1432_v7 = vadd.f32 %v3680_v25, %v1431_v10  ;;  %v1534_v14 = vsub.f32 0.0, %v1440_v9 }
 0x2f1   :  { %v1623_v13 = vadd.f32 1.0, %v3000_v11  ;;  %v3002_v15 = vpop.eup %3001 }
 0x2f2   :  { %3015 = vpow2.f32 %v1571_v12  ;;  %v1532_v16 = vsub.f32 0.0, %v1432_v7  ;;  %v1577_v24 = vmul.f32 1.442695, %v1534_v14 }
 0x2f3   :  { %v3004_v17 = vpop.eup %3003  ;;  %3017 = vrcp.f32 %v1623_v13 }
 0x2f4   :  { %v3006_v20 = vpop.eup %3005  ;;  %v1573_v22 = vmul.f32 1.442695, %v1532_v16  ;;  %v3701_v23 = vpack.c.bf16 %v3004_v17, %v3002_v15 }
 0x2f5   :  { %v1624_v19 = vadd.f32 1.0, %v3006_v20  ;;  %v3008_v26 = vpop.eup %3007 }
 0x2f6   :  { %3019 = vpow2.f32 %v1573_v22  ;;  %2337 = vmatmul.mubr.msk.bf16.vlgmr.msra.gmra.mxu0 %vm905_vm3, %v3701_v23  ;;  %v3010_v28 = vpop.eup %3009  ;;  %v1626_v31 = vadd.f32 1.0, %v3008_v26 }
 0x2f7   :  { %3021 = vrcp.f32 %v1624_v19  ;;  %1845 = vmatprep.mubr.bf16.mxu0 %v3119_v21  ;;  %v3012_v29 = vpop.eup %3011  ;;  %v1625_v34 = vadd.f32 1.0, %v3010_v28 }
 0x2f8   :  { %3023 = vpow2.f32 %v1577_v24  ;;  %v3014_v33 = vpop.eup %3013 }
 0x2f9   :  { %3025 = vpow2.f32 %v1575_v27  ;;  %v3706_v37 = vpack.c.bf16 %v3012_v29, %v3014_v33 }
 0x2fa   :  { %v2643_v32 = vpop.f32.mrf.mxu1  ;;  %3027 = vrcp.f32 %v1626_v31 }
 0x2fb   :  { %3029 = vrcp.f32 %v1625_v34  ;;  %v1453_v41 = vadd.f32 %v2643_v32, %v3680_v25 }
 0x2fc   :  { %v1444_v35 = vpop.f32.mrf.mxu1 }
 0x2fd   :  { %v1445_v38 = vadd.f32 %v3680_v25, %v1444_v35  ;;  %v1537_v52 = vsub.f32 0.0, %v1453_v41 }
 0x2fe   :  { %v2644_v39 = vpop.f32.mrf.mxu1  ;;  %2338 = vmatmul.mubr.msk.bf16.gmra.mxu0 %vm905_vm3, %v3706_v37 }
 0x2ff   :  { %v3016_v40 = vpop.eup %3015  ;;  %v1535_v36 = vsub.f32 0.0, %v1445_v38  ;;  %v1456_v42 = vadd.f32 %v2644_v39, %v3680_v25  ;;  %1855 = vmatprep.mubr.bf16.mxu0 %v3119_v21  ;;  %v1583_v60 = vmul.f32 1.442695, %v1537_v52 }
 0x300   :  { %v1447_v44 = vpop.f32.mrf.mxu1  ;;  %v1627_v45 = vadd.f32 1.0, %v3016_v40  ;;  %v3018_v49 = vpop.eup %3017 }
 0x301   :  { %v1579_v46 = vmul.f32 1.442695, %v1535_v36  ;;  %v1538_v47 = vsub.f32 0.0, %v1456_v42  ;;  %v1448_v48 = vadd.f32 %v3680_v25, %v1447_v44 }
 0x303   :  { %v3020_v50 = vpop.eup %3019  ;;  %3031 = vpow2.f32 %v1579_v46  ;;  %v1536_v53 = vsub.f32 0.0, %v1448_v48  ;;  %v1585_v57 = vmul.f32 1.442695, %v1538_v47 }
 0x304   :  { %v3022_v55 = vpop.eup %3021  ;;  %v1628_v56 = vadd.f32 1.0, %v3020_v50  ;;  %3033 = vrcp.f32 %v1627_v45 }
 0x305   :  { %v1581_v58 = vmul.f32 1.442695, %v1536_v53  ;;  %v3715_v54 = vpack.c.bf16 %v3022_v55, %v3018_v49  ;;  %v3024_v59 = vpop.eup %3023 }
 0x306   :  { %3035 = vrcp.f32 %v1628_v56  ;;  %v3026_v61 = vpop.eup %3025  ;;  %v1630_v62 = vadd.f32 1.0, %v3024_v59 }
 0x307   :  { %3037 = vpow2.f32 %v1581_v58  ;;  %2339 = vmatmul.mubr.msk.bf16.gmra.mxu0 %vm905_vm3, %v3715_v54  ;;  %v3028_v0 = vpop.eup %3027  ;;  %v1629_v1 = vadd.f32 1.0, %v3026_v61 }
 0x308   :  { %1865 = vmatprep.mubr.bf16.mxu0 %v3119_v21  ;;  %3039 = vpow2.f32 %v1585_v57  ;;  %v3030_v30 = vpop.eup %3029 }
 0x309   :  { %v2647_v63 = vpop.f32.mrf.mxu1  ;;  %3041 = vpow2.f32 %v1583_v60  ;;  %v3721_v2 = vpack.c.bf16 %v3028_v0, %v3030_v30 }
 0x30a   :  { %3043 = vrcp.f32 %v1630_v62  ;;  %v1469_v9 = vadd.f32 %v2647_v63, %v3680_v25 }
 0x30b   :  { %v1460_v3 = vpop.f32.mrf.mxu1  ;;  %3045 = vrcp.f32 %v1629_v1 }
 0x30c   :  { %v1461_v4 = vadd.f32 %v3680_v25, %v1460_v3  ;;  %v1541_v17 = vsub.f32 0.0, %v1469_v9 }
 0x30d   :  { %v2648_v5 = vpop.f32.mrf.mxu1 }
 0x30e   :  { %v1539_v6 = vsub.f32 0.0, %v1461_v4  ;;  %v1472_v8 = vadd.f32 %v2648_v5, %v3680_v25  ;;  %v1591_v27 = vmul.f32 1.442695, %v1541_v17 }
 0x30f   :  { %2340 = vmatmul.mubr.msk.bf16.gmra.mxu0 %vm905_vm3, %v3721_v2  ;;  %v1463_v43 = vpop.f32.mrf.mxu1 }
 0x310   :  { %v3032_v10 = vpop.eup %3031  ;;  %v1587_v11 = vmul.f32 1.442695, %v1539_v6  ;;  %v1464_v12 = vadd.f32 %v3680_v25, %v1463_v43  ;;  %1875 = vmatprep.mubr.bf16.mxu0 %v3119_v21  ;;  %v1542_v13 = vsub.f32 0.0, %v1472_v8 }
 0x311   :  { %v1631_v7 = vadd.f32 1.0, %v3032_v10  ;;  %v3034_v14 = vpop.eup %3033 }
 0x312   :  { %3047 = vpow2.f32 %v1587_v11  ;;  %v1540_v15 = vsub.f32 0.0, %v1464_v12  ;;  %v1593_v24 = vmul.f32 1.442695, %v1542_v13 }
 0x313   :  { %v3036_v16 = vpop.eup %3035  ;;  %3049 = vrcp.f32 %v1631_v7 }
 0x314   :  { %v3038_v18 = vpop.eup %3037  ;;  %v1589_v20 = vmul.f32 1.442695, %v1540_v15  ;;  %v3729_v22 = vpack.c.bf16 %v3036_v16, %v3034_v14 }
 0x315   :  { %v1632_v19 = vadd.f32 1.0, %v3038_v18  ;;  %v3040_v26 = vpop.eup %3039 }
 0x316   :  { %3051 = vpow2.f32 %v1589_v20  ;;  %v3042_v28 = vpop.eup %3041  ;;  %v1634_v29 = vadd.f32 1.0, %v3040_v26 }
 0x317   :  { %3053 = vrcp.f32 %v1632_v19  ;;  %2341 = vmatmul.mubr.msk.bf16.gmra.mxu0 %vm905_vm3, %v3729_v22  ;;  %v3044_v31 = vpop.eup %3043  ;;  %v1633_v33 = vadd.f32 1.0, %v3042_v28 }
 0x318   :  { %1885 = vmatprep.mubr.bf16.mxu0 %v3119_v21  ;;  %3055 = vpow2.f32 %v1593_v24  ;;  %v3046_v34 = vpop.eup %3045 }
 0x319   :  { %3057 = vpow2.f32 %v1591_v27  ;;  %v3735_v39 = vpack.c.bf16 %v3044_v31, %v3046_v34 }
 0x31a   :  { %v2651_v32 = vpop.f32.mrf.mxu1  ;;  %3059 = vrcp.f32 %v1634_v29 }
 0x31b   :  { %3061 = vrcp.f32 %v1633_v33  ;;  %v1485_v36 = vadd.f32 %v2651_v32, %v3680_v25 }
 0x31c   :  { %v1476_v35 = vpop.f32.mrf.mxu1 }
 0x31d   :  { %v1477_v38 = vadd.f32 %v3680_v25, %v1476_v35  ;;  %v1545_v53 = vsub.f32 0.0, %v1485_v36 }
 0x31e   :  { %v2652_v40 = vpop.f32.mrf.mxu1 }
 0x31f   :  { %v3048_v41 = vpop.eup %3047  ;;  %v1543_v42 = vsub.f32 0.0, %v1477_v38  ;;  %v1488_v44 = vadd.f32 %v2652_v40, %v3680_v25  ;;  %2342 = vmatmul.mubr.msk.bf16.gmra.mxu0 %vm905_vm3, %v3735_v39  ;;  %v1599_v62 = vmul.f32 1.442695, %v1545_v53 }
 0x320   :  { %v1479_v45 = vpop.f32.mrf.mxu1  ;;  %1895 = vmatprep.mubr.bf16.mxu0 %v3119_v21  ;;  %v1635_v46 = vadd.f32 1.0, %v3048_v41  ;;  %v3050_v50 = vpop.eup %3049 }
 0x321   :  { %v1595_v47 = vmul.f32 1.442695, %v1543_v42  ;;  %v1546_v48 = vsub.f32 0.0, %v1488_v44  ;;  %v1480_v49 = vadd.f32 %v3680_v25, %v1479_v45 }
 0x323   :  { %v3052_v52 = vpop.eup %3051  ;;  %3063 = vpow2.f32 %v1595_v47  ;;  %v1544_v55 = vsub.f32 0.0, %v1480_v49  ;;  %v1601_v58 = vmul.f32 1.442695, %v1546_v48 }
 0x324   :  { %v3054_v56 = vpop.eup %3053  ;;  %v1636_v57 = vadd.f32 1.0, %v3052_v52  ;;  %3065 = vrcp.f32 %v1635_v46 }
 0x325   :  { %v1597_v59 = vmul.f32 1.442695, %v1544_v55  ;;  %v3743_v60 = vpack.c.bf16 %v3054_v56, %v3050_v50  ;;  %v3056_v61 = vpop.eup %3055 }
 0x326   :  { %3067 = vrcp.f32 %v1636_v57  ;;  %v3058_v63 = vpop.eup %3057  ;;  %v1638_v0 = vadd.f32 1.0, %v3056_v61 }
 0x327   :  { %3069 = vpow2.f32 %v1597_v59  ;;  %2343 = vmatmul.mubr.msk.bf16.gmra.mxu0 %vm905_vm3, %v3743_v60  ;;  %v3060_v3 = vpop.eup %3059  ;;  %v1637_v30 = vadd.f32 1.0, %v3058_v63 }
 0x328   :  { %1905 = vmatprep.mubr.bf16.mxu0 %v3119_v21  ;;  %3071 = vpow2.f32 %v1601_v58  ;;  %v3062_v5 = vpop.eup %3061 }
 0x329   :  { %v2655_v1 = vpop.f32.mrf.mxu1  ;;  %3073 = vpow2.f32 %v1599_v62  ;;  %v3749_v9 = vpack.c.bf16 %v3060_v3, %v3062_v5 }
 0x32a   :  { %3075 = vrcp.f32 %v1638_v0  ;;  %v1501_v11 = vadd.f32 %v2655_v1, %v3680_v25 }
 0x32b   :  { %v1492_v4 = vpop.f32.mrf.mxu1  ;;  %3077 = vrcp.f32 %v1637_v30 }
 0x32c   :  { %v1493_v6 = vadd.f32 %v3680_v25, %v1492_v4  ;;  %v1549_v19 = vsub.f32 0.0, %v1501_v11 }
 0x32d   :  { %v2656_v8 = vpop.f32.mrf.mxu1 }
 0x32e   :  { %v1547_v43 = vsub.f32 0.0, %v1493_v6  ;;  %v1504_v10 = vadd.f32 %v2656_v8, %v3680_v25  ;;  %v1607_v32 = vmul.f32 1.442695, %v1549_v19 }
 0x32f   :  { %2344 = vmatmul.mubr.msk.bf16.gmra.mxu0 %vm905_vm3, %v3749_v9  ;;  %v1495_v12 = vpop.f32.mrf.mxu1 }
 0x330   :  { %v3064_v7 = vpop.eup %3063  ;;  %v1603_v13 = vmul.f32 1.442695, %v1547_v43  ;;  %v1496_v14 = vadd.f32 %v3680_v25, %v1495_v12  ;;  %1915 = vmatprep.mubr.bf16.mxu0 %v3119_v21  ;;  %v1550_v16 = vsub.f32 0.0, %v1504_v10 }
 0x331   :  { %v1639_v15 = vadd.f32 1.0, %v3064_v7  ;;  %v3066_v17 = vpop.eup %3065 }
 0x332   :  { %3079 = vpow2.f32 %v1603_v13  ;;  %v1548_v18 = vsub.f32 0.0, %v1496_v14  ;;  %v1609_v29 = vmul.f32 1.442695, %v1550_v16 }
 0x333   :  { %v3068_v20 = vpop.eup %3067  ;;  %3081 = vrcp.f32 %v1639_v15 }
 0x334   :  { %v3070_v24 = vpop.eup %3069  ;;  %v1605_v26 = vmul.f32 1.442695, %v1548_v18  ;;  %v3757_v27 = vpack.c.bf16 %v3068_v20, %v3066_v17 }
 0x335   :  { %v1640_v28 = vadd.f32 1.0, %v3070_v24  ;;  %v3072_v31 = vpop.eup %3071 }
 0x336   :  { %3083 = vpow2.f32 %v1605_v26  ;;  %v3074_v33 = vpop.eup %3073  ;;  %v1642_v34 = vadd.f32 1.0, %v3072_v31 }
 0x337   :  { %3085 = vrcp.f32 %v1640_v28  ;;  %2345 = vmatmul.mubr.msk.bf16.gmra.mxu0 %vm905_vm3, %v3757_v27  ;;  %v3076_v35 = vpop.eup %3075  ;;  %v1641_v40 = vadd.f32 1.0, %v3074_v33 }
 0x338   :  { %1925 = vmatprep.mubr.bf16.mxu0 %v3119_v21  ;;  %3087 = vpow2.f32 %v1609_v29  ;;  %v3078_v36 = vpop.eup %3077 }
 0x339   :  { %3089 = vpow2.f32 %v1607_v32  ;;  %v3764_v46 = vpack.c.bf16 %v3076_v35, %v3078_v36  ;;  %v2734_v35 = vld [vmem:[%s4253_s7 + $0x8] ss:$12 sps:$4 sm:$0xff]  }
 0x33a   :  { %v2659_v38 = vpop.f32.mrf.mxu1  ;;  %3091 = vrcp.f32 %v1642_v34  ;;  %v1801_v34 = vsel %vm954_vm2, %v3692_v51, 0 }
 0x33b   :  { %v1517_v41 = vadd.f32 %v2659_v38, %v3680_v25  ;;  %3093 = vrcp.f32 %v1641_v40 }
 0x33c   :  { %v1508_v42 = vpop.f32.mrf.mxu1 }
 0x33d   :  { %v1553_v44 = vsub.f32 0.0, %v1517_v41  ;;  %v1509_v45 = vadd.f32 %v3680_v25, %v1508_v42 }
 0x33e   :  { %v2660_v47 = vpop.f32.mrf.mxu1 }
 0x33f   :  { %v3080_v48 = vpop.eup %3079  ;;  %v1615_v49 = vmul.f32 1.442695, %v1553_v44  ;;  %v1551_v50 = vsub.f32 0.0, %v1509_v45  ;;  %v1520_v52 = vadd.f32 %v2660_v47, %v3680_v25  ;;  %2346 = vmatmul.mubr.msk.bf16.gmra.mxu0 %vm905_vm3, %v3764_v46 }
 0x340   :  { %v1643_v53 = vadd.f32 1.0, %v3080_v48  ;;  %v1511_v55 = vpop.f32.mrf.mxu1  ;;  %1935 = vmatprep.mubr.bf16.mxu0 %v3119_v21  ;;  %v3082_v59 = vpop.eup %3081 }
 0x341   :  { %3095 = vpow2.f32 %v1615_v49  ;;  %v1611_v56 = vmul.f32 1.442695, %v1551_v50  ;;  %v1554_v57 = vsub.f32 0.0, %v1520_v52  ;;  %v1512_v58 = vadd.f32 %v3680_v25, %v1511_v55 }
 0x343   :  { %v3084_v61 = vpop.eup %3083  ;;  %3097 = vpow2.f32 %v1611_v56  ;;  %v1617_v62 = vmul.f32 1.442695, %v1554_v57  ;;  %v1552_v63 = vsub.f32 0.0, %v1512_v58 }
 0x344   :  { %v3086_v0 = vpop.eup %3085  ;;  %3099 = vrcp.f32 %v1643_v53  ;;  %v1644_v1 = vadd.f32 1.0, %v3084_v61 }
 0x345   :  { %3101 = vpow2.f32 %v1617_v62  ;;  %v1613_v3 = vmul.f32 1.442695, %v1552_v63  ;;  %v1693_v30 = vpack.c.bf16 %v3086_v0, %v3082_v59  ;;  %v3088_v4 = vpop.eup %3087 }
 0x346   :  { %3103 = vrcp.f32 %v1644_v1  ;;  %v3090_v5 = vpop.eup %3089  ;;  %v1646_v25 = vadd.f32 1.0, %v3088_v4 }
 0x347   :  { %3105 = vpow2.f32 %v1613_v3  ;;  %2347 = vmatmul.mubr.msk.bf16.gmra.mxu0 %vm905_vm3, %v1693_v30  ;;  %v3092_v6 = vpop.eup %3091  ;;  %v1645_v8 = vadd.f32 1.0, %v3090_v5 }
 0x348   :  { %1945 = vmatprep.mubr.bf16.mxu0 %v3119_v21  ;;  %v3094_v43 = vpop.eup %3093  ;;  %3107 = vrcp.f32 %v1646_v25 }
 0x349   :  { %v1694_v10 = vpack.c.bf16 %v3092_v6, %v3094_v43  ;;  %3109 = vrcp.f32 %v1645_v8 }
 0x34e   :  { %v3096_v11 = vpop.eup %3095 }
 0x34f   :  { %2348 = vmatmul.mubr.msk.bf16.gmra.mxu0 %vm905_vm3, %v1694_v10  ;;  %v1649_v7 = vadd.f32 1.0, %v3096_v11 }
 0x350   :  { %v3098_v12 = vpop.eup %3097  ;;  %1955 = vmatprep.mubr.bf16.mxu0 %v3119_v21 }
 0x351   :  { %v3100_v13 = vpop.eup %3099  ;;  %v1647_v15 = vadd.f32 1.0, %v3098_v12  ;;  %3111 = vrcp.f32 %v1649_v7 }
 0x352   :  { %v3102_v14 = vpop.eup %3101 }
 0x353   :  { %v3104_v16 = vpop.eup %3103  ;;  %v1650_v17 = vadd.f32 1.0, %v3102_v14 }
 0x354   :  { %v3106_v18 = vpop.eup %3105  ;;  %v1695_v20 = vpack.c.bf16 %v3104_v16, %v3100_v13 }
 0x355   :  { %3113 = vrcp.f32 %v1650_v17  ;;  %v1648_v19 = vadd.f32 1.0, %v3106_v18  ;;  %v3108_v24 = vpop.eup %3107 }
 0x356   :  { %3115 = vrcp.f32 %v1647_v15  ;;  %v3110_v26 = vpop.eup %3109 }
 0x357   :  { %3117 = vrcp.f32 %v1648_v19  ;;  %2349 = vmatmul.mubr.msk.bf16.gmra.mxu0 %vm905_vm3, %v1695_v20  ;;  %v1696_v28 = vpack.c.bf16 %v3108_v24, %v3110_v26 }
 0x358   :  { %1965 = vmatprep.mubr.bf16.mxu0 %v3119_v21 }
 0x35e   :  { %v3112_v29 = vpop.eup %3111 }
 0x35f   :  { %2350 = vmatmul.mubr.msk.bf16.gmra.mxu0 %vm905_vm3, %v1696_v28 }
 0x360   :  { %1975 = vmatprep.mubr.bf16.mxu0 %v3119_v21  ;;  %v1707_v21 = vlaneseq }
 0x362   :  { %v3114_v31 = vpop.eup %3113  ;;  %v3812_v51 = vshrl.u32 %v1707_v21, 7 }
 0x363   :  { %v3116_v32 = vpop.eup %3115  ;;  %v1698_v33 = vpack.c.bf16 %v3114_v31, %v3112_v29 }
 0x364   :  { %v3118_v38 = vpop.eup %3117 }
 0x365   :  { %2352 = vmatmul.mubr.msk.bf16.vlgmr.msra.gmra.mxu1 %vm905_vm3, %v1698_v33  ;;  %v1697_v40 = vpack.c.bf16 %v3118_v38, %v3116_v32 }
 0x366   :  { %2662 = vmatpush3.bf16.msra.mxu1 %v1801_v34  ;;  %2665 = vmatprep.mubr.msk.bf16.mxu1 %vm905_vm3, %v3701_v23  ;;  %v1709_v23 = vsub.s32 0, %v3812_v51 }
 0x367   :  { %2351 = vmatmul.mubr.msk.bf16.gmra.mxu0 %vm905_vm3, %v1697_v40  ;;  %2663 = vmatprep.subr.bf16.mxu1 %v2734_v35 }
 0x36a   :  { %2664 = vmatpush3.bf16.msra.mxu1 %v2734_v35 }
 0x36d   :  { %2666 = vmatmul.mubr.msk.bf16.vlgmr.msra.gmra.mxu1 %vm905_vm3, %v3706_v37  ;;  %v3818_v37 = vld [vmem:[%s4255_s8] sm:$0x7] }
 0x36e   :  { %2669 = vmatprep.mubr.msk.bf16.mxu1 %vm905_vm3, %v3715_v54  ;;  %v1713_v54 = vsub.s32 1, %v3812_v51 }
 0x375   :  { %2670 = vmatmul.mubr.msk.bf16.gmra.mxu1 %vm905_vm3, %v3721_v2  ;;  %v3822_v2 = vrot.slane %v3818_v37, %v1709_v23 }
 0x376   :  { %2673 = vmatprep.mubr.msk.bf16.mxu1 %vm905_vm3, %v3729_v22  ;;  %v3825_v22 = vrot.slane %v3818_v37, %v1713_v54 }
 0x37d   :  { %2674 = vmatmul.mubr.msk.bf16.gmra.mxu1 %vm905_vm3, %v3735_v39 }
 0x37e   :  { %2677 = vmatprep.mubr.msk.bf16.mxu1 %vm905_vm3, %v3743_v60 }
 0x385   :  { %2678 = vmatmul.mubr.msk.bf16.gmra.mxu1 %vm905_vm3, %v3749_v9 }
 0x386   :  { %2681 = vmatprep.mubr.msk.bf16.mxu1 %vm905_vm3, %v3757_v27 }
 0x38d   :  { %2682 = vmatmul.mubr.msk.bf16.gmra.mxu1 %vm905_vm3, %v3764_v46 }
 0x38e   :  { %2685 = vmatprep.mubr.msk.bf16.mxu1 %vm905_vm3, %v1693_v30 }
 0x395   :  { %2686 = vmatmul.mubr.msk.bf16.gmra.mxu1 %vm905_vm3, %v1694_v10 }
 0x396   :  { %2689 = vmatprep.mubr.msk.bf16.mxu1 %vm905_vm3, %v1695_v20 }
 0x39d   :  { %2690 = vmatmul.mubr.msk.bf16.gmra.mxu1 %vm905_vm3, %v1696_v28 }
 0x39e   :  { %2693 = vmatprep.mubr.msk.bf16.mxu1 %vm905_vm3, %v1697_v40 }
 0x3a5   :  { %2694 = vmatmul.mubr.msk.bf16.gmra.mxu1 %vm905_vm3, %v1698_v33 }
 0x3b6   :  { %v1837_v39 = vpop.f32.mrf.mxu0 }
 0x3b7   :  { %v1838_v60 = vadd.f32 %v1837_v39, %v3822_v2 }
 0x3b8   :  { %v1839_v9 = vpop.f32.mrf.mxu0 }
 0x3b9   :  { %2157 = vst [vmem:[%s4256_s9] sm:$0xff] %v1838_v60  ;;  %v1840_v27 = vadd.f32 %v1839_v9, %v3825_v22 }
 0x3ba   :  { %v1841_v41 = vpop.f32.mrf.mxu0 }
 0x3bb   :  { %2158 = vst [vmem:[%s4256_s9 + $0x8] sm:$0xff] %v1840_v27  ;;  %v1842_v36 = vadd.f32 %v1841_v41, %v3822_v2 }
 0x3bc   :  { %v1843_v42 = vpop.f32.mrf.mxu0 }
 0x3bd   :  { %2160 = vst [vmem:[%s4256_s9 + $0x18] sm:$0xff] %v1842_v36  ;;  %v1844_v44 = vadd.f32 %v1843_v42, %v3825_v22 }
 0x3be   :  { %v1847_v45 = vpop.f32.mrf.mxu0 }
 0x3bf   :  { %2161 = vst [vmem:[%s4256_s9 + $0x20] sm:$0xff] %v1844_v44  ;;  %v1848_v46 = vadd.f32 %v1847_v45, %v3822_v2 }
 0x3c0   :  { %v1849_v47 = vpop.f32.mrf.mxu0 }
 0x3c1   :  { %2163 = vst [vmem:[%s4256_s9 + $0x30] sm:$0xff] %v1848_v46  ;;  %v1850_v48 = vadd.f32 %v1849_v47, %v3825_v22 }
 0x3c2   :  { %v1851_v49 = vpop.f32.mrf.mxu0 }
 0x3c3   :  { %2164 = vst [vmem:[%s4256_s9 + $0x38] sm:$0xff] %v1850_v48  ;;  %v1852_v50 = vadd.f32 %v1851_v49, %v3822_v2 }
 0x3c4   :  { %v1853_v52 = vpop.f32.mrf.mxu0 }
 0x3c5   :  { %2166 = vst [vmem:[%s4256_s9 + $0x48] sm:$0xff] %v1852_v50  ;;  %v1854_v53 = vadd.f32 %v1853_v52, %v3825_v22 }
 0x3c7   :  { %2167 = vst [vmem:[%s4256_s9 + $0x50] sm:$0xff] %v1854_v53  ;;  %v1857_v55 = vpop.f32.mrf.mxu0 }
 0x3c8   :  { %v1858_v56 = vadd.f32 %v1857_v55, %v3822_v2 }
 0x3c9   :  { %v1859_v57 = vpop.f32.mrf.mxu0 }
 0x3ca   :  { %2169 = vst [vmem:[%s4256_s9 + $0x60] sm:$0xff] %v1858_v56  ;;  %v1860_v58 = vadd.f32 %v1859_v57, %v3825_v22 }
 0x3cb   :  { %v1861_v59 = vpop.f32.mrf.mxu0 }
 0x3cc   :  { %2170 = vst [vmem:[%s4256_s9 + $0x68] sm:$0xff] %v1860_v58  ;;  %v1862_v61 = vadd.f32 %v1861_v59, %v3822_v2 }
 0x3cd   :  { %v1863_v62 = vpop.f32.mrf.mxu0 }
 0x3ce   :  { %2172 = vst [vmem:[%s4256_s9 + $0x78] sm:$0xff] %v1862_v61  ;;  %v1864_v63 = vadd.f32 %v1863_v62, %v3825_v22 }
 0x3cf   :  { %v1867_v0 = vpop.f32.mrf.mxu0 }
 0x3d0   :  { %2173 = vst [vmem:[%s4256_s9 + $0x80] sm:$0xff] %v1864_v63  ;;  %v1868_v1 = vadd.f32 %v1867_v0, %v3822_v2 }
 0x3d1   :  { %v1869_v3 = vpop.f32.mrf.mxu0 }
 0x3d2   :  { %2175 = vst [vmem:[%s4256_s9 + $0x90] sm:$0xff] %v1868_v1  ;;  %v1870_v30 = vadd.f32 %v1869_v3, %v3825_v22 }
 0x3d3   :  { %v1871_v4 = vpop.f32.mrf.mxu0 }
 0x3d4   :  { %2176 = vst [vmem:[%s4256_s9 + $0x98] sm:$0xff] %v1870_v30  ;;  %v1872_v5 = vadd.f32 %v1871_v4, %v3822_v2 }
 0x3d5   :  { %v1873_v25 = vpop.f32.mrf.mxu0 }
 0x3d6   :  { %2178 = vst [vmem:[%s4256_s9 + $0xa8] sm:$0xff] %v1872_v5  ;;  %v1874_v6 = vadd.f32 %v1873_v25, %v3825_v22 }
 0x3d7   :  { %v1877_v8 = vpop.f32.mrf.mxu0 }
 0x3d8   :  { %2179 = vst [vmem:[%s4256_s9 + $0xb0] sm:$0xff] %v1874_v6  ;;  %v1878_v43 = vadd.f32 %v1877_v8, %v3822_v2 }
 0x3d9   :  { %v1879_v10 = vpop.f32.mrf.mxu0 }
 0x3da   :  { %2181 = vst [vmem:[%s4256_s9 + $0xc0] sm:$0xff] %v1878_v43  ;;  %v1880_v11 = vadd.f32 %v1879_v10, %v3825_v22 }
 0x3db   :  { %v1881_v12 = vpop.f32.mrf.mxu0 }
 0x3dc   :  { %2182 = vst [vmem:[%s4256_s9 + $0xc8] sm:$0xff] %v1880_v11  ;;  %v1882_v7 = vadd.f32 %v1881_v12, %v3822_v2 }
 0x3dd   :  { %v1883_v13 = vpop.f32.mrf.mxu0 }
 0x3de   :  { %2184 = vst [vmem:[%s4256_s9 + $0xd8] sm:$0xff] %v1882_v7  ;;  %v1884_v14 = vadd.f32 %v1883_v13, %v3825_v22 }
 0x3df   :  { %v1887_v15 = vpop.f32.mrf.mxu0 }
 0x3e0   :  { %2185 = vst [vmem:[%s4256_s9 + $0xe0] sm:$0xff] %v1884_v14  ;;  %v1888_v16 = vadd.f32 %v1887_v15, %v3822_v2 }
 0x3e1   :  { %v1889_v17 = vpop.f32.mrf.mxu0 }
 0x3e2   :  { %2187 = vst [vmem:[%s4256_s9 + $0xf0] sm:$0xff] %v1888_v16  ;;  %v1890_v18 = vadd.f32 %v1889_v17, %v3825_v22 }
 0x3e3   :  { %v1891_v20 = vpop.f32.mrf.mxu0 }
 0x3e4   :  { %2188 = vst [vmem:[%s4256_s9 + $0xf8] sm:$0xff] %v1890_v18  ;;  %v1892_v19 = vadd.f32 %v1891_v20, %v3822_v2 }
 0x3e5   :  { %v1893_v24 = vpop.f32.mrf.mxu0 }
 0x3e6   :  { %2190 = vst [vmem:[%s4256_s9 + $0x108] sm:$0xff] %v1892_v19  ;;  %v1894_v26 = vadd.f32 %v1893_v24, %v3825_v22 }
 0x3e7   :  { %v1897_v28 = vpop.f32.mrf.mxu0 }
 0x3e8   :  { %2191 = vst [vmem:[%s4256_s9 + $0x110] sm:$0xff] %v1894_v26  ;;  %v1898_v29 = vadd.f32 %v1897_v28, %v3822_v2 }
 0x3e9   :  { %v1899_v31 = vpop.f32.mrf.mxu0 }
 0x3ea   :  { %2193 = vst [vmem:[%s4256_s9 + $0x120] sm:$0xff] %v1898_v29  ;;  %v1900_v32 = vadd.f32 %v1899_v31, %v3825_v22 }
 0x3eb   :  { %v1901_v33 = vpop.f32.mrf.mxu0 }
 0x3ec   :  { %2194 = vst [vmem:[%s4256_s9 + $0x128] sm:$0xff] %v1900_v32  ;;  %v1902_v34 = vadd.f32 %v1901_v33, %v3822_v2 }
 0x3ed   :  { %v1903_v35 = vpop.f32.mrf.mxu0 }
 0x3ee   :  { %2196 = vst [vmem:[%s4256_s9 + $0x138] sm:$0xff] %v1902_v34  ;;  %v1904_v38 = vadd.f32 %v1903_v35, %v3825_v22  ;;  %v1717_v35 = vsub.s32 2, %v3812_v51 }
 0x3ef   :  { %v1907_v40 = vpop.f32.mrf.mxu0 }
 0x3f0   :  { %2197 = vst [vmem:[%s4256_s9 + $0x140] sm:$0xff] %v1904_v38  ;;  %v1908_v21 = vadd.f32 %v1907_v40, %v3822_v2 }
 0x3f1   :  { %v1909_v23 = vpop.f32.mrf.mxu0 }
 0x3f2   :  { %2199 = vst [vmem:[%s4256_s9 + $0x150] sm:$0xff] %v1908_v21  ;;  %v1910_v54 = vadd.f32 %v1909_v23, %v3825_v22 }
 0x3f3   :  { %v1911_v39 = vpop.f32.mrf.mxu0 }
 0x3f4   :  { %2200 = vst [vmem:[%s4256_s9 + $0x158] sm:$0xff] %v1910_v54  ;;  %v1912_v60 = vadd.f32 %v1911_v39, %v3822_v2 }
 0x3f5   :  { %v1913_v9 = vpop.f32.mrf.mxu0 }
 0x3f6   :  { %2202 = vst [vmem:[%s4256_s9 + $0x168] sm:$0xff] %v1912_v60  ;;  %v1914_v27 = vadd.f32 %v1913_v9, %v3825_v22  ;;  %v4067_v9 = vrot.slane %v3818_v37, %v1717_v35 }
 0x3f7   :  { %v1917_v41 = vpop.f32.mrf.mxu0 }
 0x3f8   :  { %2203 = vst [vmem:[%s4256_s9 + $0x170] sm:$0xff] %v1914_v27  ;;  %v1918_v36 = vadd.f32 %v1917_v41, %v3822_v2 }
 0x3f9   :  { %v1919_v42 = vpop.f32.mrf.mxu0 }
 0x3fa   :  { %2205 = vst [vmem:[%s4256_s9 + $0x180] sm:$0xff] %v1918_v36  ;;  %v1920_v44 = vadd.f32 %v1919_v42, %v3825_v22 }
 0x3fb   :  { %v1921_v45 = vpop.f32.mrf.mxu0 }
 0x3fc   :  { %2206 = vst [vmem:[%s4256_s9 + $0x188] sm:$0xff] %v1920_v44  ;;  %v1922_v46 = vadd.f32 %v1921_v45, %v3822_v2 }
 0x3fd   :  { %v1923_v47 = vpop.f32.mrf.mxu0 }
 0x3fe   :  { %2208 = vst [vmem:[%s4256_s9 + $0x198] sm:$0xff] %v1922_v46  ;;  %v1924_v48 = vadd.f32 %v1923_v47, %v3825_v22 }
 0x3ff   :  { %v1927_v49 = vpop.f32.mrf.mxu0 }
 0x400   :  { %2209 = vst [vmem:[%s4256_s9 + $0x1a0] sm:$0xff] %v1924_v48  ;;  %v1928_v50 = vadd.f32 %v1927_v49, %v3822_v2 }
 0x401   :  { %v1929_v52 = vpop.f32.mrf.mxu0 }
 0x402   :  { %2211 = vst [vmem:[%s4256_s9 + $0x1b0] sm:$0xff] %v1928_v50  ;;  %v1930_v53 = vadd.f32 %v1929_v52, %v3825_v22 }
 0x403   :  { %v1931_v55 = vpop.f32.mrf.mxu0 }
 0x404   :  { %2212 = vst [vmem:[%s4256_s9 + $0x1b8] sm:$0xff] %v1930_v53  ;;  %v1932_v56 = vadd.f32 %v1931_v55, %v3822_v2 }
 0x405   :  { %v1933_v57 = vpop.f32.mrf.mxu0 }
 0x406   :  { %2214 = vst [vmem:[%s4256_s9 + $0x1c8] sm:$0xff] %v1932_v56  ;;  %v1934_v58 = vadd.f32 %v1933_v57, %v3825_v22 }
 0x407   :  { %v1937_v59 = vpop.f32.mrf.mxu0 }
 0x408   :  { %2215 = vst [vmem:[%s4256_s9 + $0x1d0] sm:$0xff] %v1934_v58  ;;  %v1938_v61 = vadd.f32 %v1937_v59, %v3822_v2 }
 0x409   :  { %v1939_v62 = vpop.f32.mrf.mxu0 }
 0x40a   :  { %2217 = vst [vmem:[%s4256_s9 + $0x1e0] sm:$0xff] %v1938_v61  ;;  %v1940_v63 = vadd.f32 %v1939_v62, %v3825_v22 }
 0x40b   :  { %v1941_v0 = vpop.f32.mrf.mxu0 }
 0x40c   :  { %2218 = vst [vmem:[%s4256_s9 + $0x1e8] sm:$0xff] %v1940_v63  ;;  %v1942_v1 = vadd.f32 %v1941_v0, %v3822_v2 }
 0x40d   :  { %v1943_v3 = vpop.f32.mrf.mxu0 }
 0x40e   :  { %2220 = vst [vmem:[%s4256_s9 + $0x1f8] sm:$0xff] %v1942_v1  ;;  %v1944_v30 = vadd.f32 %v1943_v3, %v3825_v22 }
 0x40f   :  { %v1947_v4 = vpop.f32.mrf.mxu0 }
 0x410   :  { %2221 = vst [vmem:[%s4256_s9 + $0x200] sm:$0xff] %v1944_v30  ;;  %v1948_v5 = vadd.f32 %v1947_v4, %v3822_v2 }
 0x411   :  { %v1949_v25 = vpop.f32.mrf.mxu0 }
 0x412   :  { %2223 = vst [vmem:[%s4256_s9 + $0x210] sm:$0xff] %v1948_v5  ;;  %v1950_v6 = vadd.f32 %v1949_v25, %v3825_v22 }
 0x413   :  { %v1951_v8 = vpop.f32.mrf.mxu0 }
 0x414   :  { %2224 = vst [vmem:[%s4256_s9 + $0x218] sm:$0xff] %v1950_v6  ;;  %v1952_v43 = vadd.f32 %v1951_v8, %v3822_v2 }
 0x415   :  { %v1953_v10 = vpop.f32.mrf.mxu0 }
 0x416   :  { %2226 = vst [vmem:[%s4256_s9 + $0x228] sm:$0xff] %v1952_v43  ;;  %v1954_v11 = vadd.f32 %v1953_v10, %v3825_v22 }
 0x417   :  { %v1957_v12 = vpop.f32.mrf.mxu0 }
 0x418   :  { %2227 = vst [vmem:[%s4256_s9 + $0x230] sm:$0xff] %v1954_v11  ;;  %v1958_v7 = vadd.f32 %v1957_v12, %v3822_v2 }
 0x419   :  { %v1959_v13 = vpop.f32.mrf.mxu0 }
 0x41a   :  { %2229 = vst [vmem:[%s4256_s9 + $0x240] sm:$0xff] %v1958_v7  ;;  %v1960_v14 = vadd.f32 %v1959_v13, %v3825_v22 }
 0x41b   :  { %v1961_v15 = vpop.f32.mrf.mxu0 }
 0x41c   :  { %2230 = vst [vmem:[%s4256_s9 + $0x248] sm:$0xff] %v1960_v14  ;;  %v1962_v16 = vadd.f32 %v1961_v15, %v3822_v2 }
 0x41d   :  { %v1963_v17 = vpop.f32.mrf.mxu0 }
 0x41e   :  { %2232 = vst [vmem:[%s4256_s9 + $0x258] sm:$0xff] %v1962_v16  ;;  %v1964_v18 = vadd.f32 %v1963_v17, %v3825_v22 }
 0x41f   :  { %v1967_v20 = vpop.f32.mrf.mxu0 }
 0x420   :  { %2233 = vst [vmem:[%s4256_s9 + $0x260] sm:$0xff] %v1964_v18  ;;  %v1968_v19 = vadd.f32 %v1967_v20, %v3822_v2 }
 0x421   :  { %v1969_v24 = vpop.f32.mrf.mxu0 }
 0x422   :  { %2235 = vst [vmem:[%s4256_s9 + $0x270] sm:$0xff] %v1968_v19  ;;  %v1970_v26 = vadd.f32 %v1969_v24, %v3825_v22 }
 0x423   :  { %v1971_v28 = vpop.f32.mrf.mxu0 }
 0x424   :  { %2236 = vst [vmem:[%s4256_s9 + $0x278] sm:$0xff] %v1970_v26  ;;  %v1972_v29 = vadd.f32 %v1971_v28, %v3822_v2 }
 0x425   :  { %v1973_v31 = vpop.f32.mrf.mxu0  ;;  %v1987_v32 = vpop.f32.mrf.mxu1 }
 0x426   :  { %2238 = vst [vmem:[%s4256_s9 + $0x288] sm:$0xff] %v1972_v29  ;;  %v1974_v33 = vadd.f32 %v1973_v31, %v3825_v22  ;;  %v1988_v34 = vadd.f32 %v1987_v32, %v3822_v2 }
 0x427   :  { %v1977_v38 = vpop.f32.mrf.mxu0  ;;  %v1989_v40 = vpop.f32.mrf.mxu1 }
 0x428   :  { %2239 = vst [vmem:[%s4256_s9 + $0x290] sm:$0xff] %v1974_v33  ;;  %2247 = vst [vmem:[%s4256_s9 + $0x2d0] sm:$0xff] %v1988_v34  ;;  %v1978_v21 = vadd.f32 %v1977_v38, %v3822_v2  ;;  %v1990_v23 = vadd.f32 %v1989_v40, %v3825_v22 }
 0x429   :  { %v1979_v54 = vpop.f32.mrf.mxu0  ;;  %v1991_v39 = vpop.f32.mrf.mxu1 }
 0x42a   :  { %2241 = vst [vmem:[%s4256_s9 + $0x2a0] sm:$0xff] %v1978_v21  ;;  %2248 = vst [vmem:[%s4256_s9 + $0x2d8] sm:$0xff] %v1990_v23  ;;  %v1980_v51 = vadd.f32 %v1979_v54, %v3825_v22  ;;  %v1992_v60 = vadd.f32 %v1991_v39, %v3822_v2 }
 0x42b   :  { %v1981_v27 = vpop.f32.mrf.mxu0  ;;  %v1993_v41 = vpop.f32.mrf.mxu1 }
 0x42c   :  { %2242 = vst [vmem:[%s4256_s9 + $0x2a8] sm:$0xff] %v1980_v51  ;;  %2250 = vst [vmem:[%s4256_s9 + $0x2e8] sm:$0xff] %v1992_v60  ;;  %v1982_v36 = vadd.f32 %v1981_v27, %v3822_v2  ;;  %v1994_v42 = vadd.f32 %v1993_v41, %v3825_v22 }
 0x42d   :  { %v1983_v44 = vpop.f32.mrf.mxu0  ;;  %v2667_v45 = vpop.f32.mrf.mxu1 }
 0x42e   :  { %2244 = vst [vmem:[%s4256_s9 + $0x2b8] sm:$0xff] %v1982_v36  ;;  %2251 = vst [vmem:[%s4256_s9 + $0x2f0] sm:$0xff] %v1994_v42  ;;  %v1984_v37 = vadd.f32 %v1983_v44, %v3825_v22  ;;  %v2039_v46 = vadd.f32 %v2667_v45, %v4067_v9 }
 0x42f   :  { %v2030_v47 = vpop.f32.mrf.mxu1 }
 0x430   :  { %2245 = vst [vmem:[%s4256_s9 + $0x2c0] sm:$0xff] %v1984_v37  ;;  %2165 = vst.msk [vmem:[%s4256_s9 + $0x40] sm:$0xff] %vm335_vm1, %v2039_v46  ;;  %v2031_v2 = vadd.f32 %v2030_v47, %v4067_v9 }
 0x431   :  { %v2668_v48 = vpop.f32.mrf.mxu1 }
 0x432   :  { %2159 = vst.msk [vmem:[%s4256_s9 + $0x10] sm:$0xff] %vm335_vm1, %v2031_v2  ;;  %v2042_v22 = vadd.f32 %v2668_v48, %v4067_v9 }
 0x433   :  { %v2033_v49 = vpop.f32.mrf.mxu1 }
 0x434   :  { %2168 = vst.msk [vmem:[%s4256_s9 + $0x58] sm:$0xff] %vm335_vm1, %v2042_v22  ;;  %v2034_v50 = vadd.f32 %v2033_v49, %v4067_v9 }
 0x435   :  { %v2671_v52 = vpop.f32.mrf.mxu1 }
 0x436   :  { %2162 = vst.msk [vmem:[%s4256_s9 + $0x28] sm:$0xff] %vm335_vm1, %v2034_v50  ;;  %v2055_v53 = vadd.f32 %v2671_v52, %v4067_v9 }
 0x437   :  { %v2046_v55 = vpop.f32.mrf.mxu1 }
 0x438   :  { %2177 = vst.msk [vmem:[%s4256_s9 + $0xa0] sm:$0xff] %vm335_vm1, %v2055_v53  ;;  %v2047_v56 = vadd.f32 %v2046_v55, %v4067_v9 }
 0x439   :  { %v2672_v57 = vpop.f32.mrf.mxu1 }
 0x43a   :  { %2171 = vst.msk [vmem:[%s4256_s9 + $0x70] sm:$0xff] %vm335_vm1, %v2047_v56  ;;  %v2058_v58 = vadd.f32 %v2672_v57, %v4067_v9 }
 0x43b   :  { %v2049_v59 = vpop.f32.mrf.mxu1 }
 0x43c   :  { %2180 = vst.msk [vmem:[%s4256_s9 + $0xb8] sm:$0xff] %vm335_vm1, %v2058_v58  ;;  %v2050_v61 = vadd.f32 %v2049_v59, %v4067_v9 }
 0x43d   :  { %v2675_v62 = vpop.f32.mrf.mxu1 }
 0x43e   :  { %2174 = vst.msk [vmem:[%s4256_s9 + $0x88] sm:$0xff] %vm335_vm1, %v2050_v61  ;;  %v2071_v63 = vadd.f32 %v2675_v62, %v4067_v9 }
 0x43f   :  { %v2062_v0 = vpop.f32.mrf.mxu1 }
 0x440   :  { %2189 = vst.msk [vmem:[%s4256_s9 + $0x100] sm:$0xff] %vm335_vm1, %v2071_v63  ;;  %v2063_v1 = vadd.f32 %v2062_v0, %v4067_v9 }
 0x441   :  { %v2676_v3 = vpop.f32.mrf.mxu1 }
 0x442   :  { %2183 = vst.msk [vmem:[%s4256_s9 + $0xd0] sm:$0xff] %vm335_vm1, %v2063_v1  ;;  %v2074_v30 = vadd.f32 %v2676_v3, %v4067_v9 }
 0x443   :  { %v2065_v4 = vpop.f32.mrf.mxu1 }
 0x444   :  { %2192 = vst.msk [vmem:[%s4256_s9 + $0x118] sm:$0xff] %vm335_vm1, %v2074_v30  ;;  %v2066_v5 = vadd.f32 %v2065_v4, %v4067_v9 }
 0x445   :  { %v2679_v25 = vpop.f32.mrf.mxu1 }
 0x446   :  { %2186 = vst.msk [vmem:[%s4256_s9 + $0xe8] sm:$0xff] %vm335_vm1, %v2066_v5  ;;  %v2087_v6 = vadd.f32 %v2679_v25, %v4067_v9 }
 0x447   :  { %v2078_v8 = vpop.f32.mrf.mxu1 }
 0x448   :  { %2201 = vst.msk [vmem:[%s4256_s9 + $0x160] sm:$0xff] %vm335_vm1, %v2087_v6  ;;  %v2079_v43 = vadd.f32 %v2078_v8, %v4067_v9 }
 0x449   :  { %v2680_v10 = vpop.f32.mrf.mxu1 }
 0x44a   :  { %2195 = vst.msk [vmem:[%s4256_s9 + $0x130] sm:$0xff] %vm335_vm1, %v2079_v43  ;;  %v2090_v11 = vadd.f32 %v2680_v10, %v4067_v9 }
 0x44b   :  { %v2081_v12 = vpop.f32.mrf.mxu1 }
 0x44c   :  { %2204 = vst.msk [vmem:[%s4256_s9 + $0x178] sm:$0xff] %vm335_vm1, %v2090_v11  ;;  %v2082_v7 = vadd.f32 %v2081_v12, %v4067_v9 }
 0x44d   :  { %v2683_v13 = vpop.f32.mrf.mxu1 }
 0x44e   :  { %2198 = vst.msk [vmem:[%s4256_s9 + $0x148] sm:$0xff] %vm335_vm1, %v2082_v7  ;;  %v2103_v14 = vadd.f32 %v2683_v13, %v4067_v9 }
 0x44f   :  { %v2094_v15 = vpop.f32.mrf.mxu1 }
 0x450   :  { %2213 = vst.msk [vmem:[%s4256_s9 + $0x1c0] sm:$0xff] %vm335_vm1, %v2103_v14  ;;  %v2095_v16 = vadd.f32 %v2094_v15, %v4067_v9 }
 0x451   :  { %v2684_v17 = vpop.f32.mrf.mxu1 }
 0x452   :  { %2207 = vst.msk [vmem:[%s4256_s9 + $0x190] sm:$0xff] %vm335_vm1, %v2095_v16  ;;  %v2106_v18 = vadd.f32 %v2684_v17, %v4067_v9 }
 0x453   :  { %v2097_v20 = vpop.f32.mrf.mxu1 }
 0x454   :  { %2216 = vst.msk [vmem:[%s4256_s9 + $0x1d8] sm:$0xff] %vm335_vm1, %v2106_v18  ;;  %v2098_v19 = vadd.f32 %v2097_v20, %v4067_v9 }
 0x455   :  { %v2687_v24 = vpop.f32.mrf.mxu1 }
 0x456   :  { %2210 = vst.msk [vmem:[%s4256_s9 + $0x1a8] sm:$0xff] %vm335_vm1, %v2098_v19  ;;  %v2119_v26 = vadd.f32 %v2687_v24, %v4067_v9 }
 0x457   :  { %v2110_v28 = vpop.f32.mrf.mxu1 }
 0x458   :  { %2225 = vst.msk [vmem:[%s4256_s9 + $0x220] sm:$0xff] %vm335_vm1, %v2119_v26  ;;  %v2111_v29 = vadd.f32 %v2110_v28, %v4067_v9 }
 0x459   :  { %v2688_v31 = vpop.f32.mrf.mxu1 }
 0x45a   :  { %2219 = vst.msk [vmem:[%s4256_s9 + $0x1f0] sm:$0xff] %vm335_vm1, %v2111_v29  ;;  %v2122_v32 = vadd.f32 %v2688_v31, %v4067_v9 }
 0x45b   :  { %v2113_v33 = vpop.f32.mrf.mxu1 }
 0x45c   :  { %2228 = vst.msk [vmem:[%s4256_s9 + $0x238] sm:$0xff] %vm335_vm1, %v2122_v32  ;;  %v2114_v34 = vadd.f32 %v2113_v33, %v4067_v9 }
 0x45d   :  { %v2691_v35 = vpop.f32.mrf.mxu1 }
 0x45e   :  { %2222 = vst.msk [vmem:[%s4256_s9 + $0x208] sm:$0xff] %vm335_vm1, %v2114_v34  ;;  %v2135_v38 = vadd.f32 %v2691_v35, %v4067_v9 }
 0x45f   :  { %v2126_v40 = vpop.f32.mrf.mxu1 }
 0x460   :  { %2237 = vst.msk [vmem:[%s4256_s9 + $0x280] sm:$0xff] %vm335_vm1, %v2135_v38  ;;  %v2127_v21 = vadd.f32 %v2126_v40, %v4067_v9 }
 0x461   :  { %v2692_v23 = vpop.f32.mrf.mxu1 }
 0x462   :  { %2231 = vst.msk [vmem:[%s4256_s9 + $0x250] sm:$0xff] %vm335_vm1, %v2127_v21  ;;  %v2138_v54 = vadd.f32 %v2692_v23, %v4067_v9 }
 0x463   :  { %v2129_v39 = vpop.f32.mrf.mxu1 }
 0x464   :  { %2240 = vst.msk [vmem:[%s4256_s9 + $0x298] sm:$0xff] %vm335_vm1, %v2138_v54  ;;  %v2130_v51 = vadd.f32 %v2129_v39, %v4067_v9 }
 0x465   :  { %v2695_v60 = vpop.f32.mrf.mxu1 }
 0x466   :  { %2234 = vst.msk [vmem:[%s4256_s9 + $0x268] sm:$0xff] %vm335_vm1, %v2130_v51  ;;  %v2151_v27 = vadd.f32 %v2695_v60, %v4067_v9 }
 0x467   :  { %v2142_v41 = vpop.f32.mrf.mxu1 }
 0x468   :  { %2249 = vst.msk [vmem:[%s4256_s9 + $0x2e0] sm:$0xff] %vm335_vm1, %v2151_v27  ;;  %v2143_v36 = vadd.f32 %v2142_v41, %v4067_v9 }
 0x469   :  { %v2696_v42 = vpop.f32.mrf.mxu1 }
 0x46a   :  { %2243 = vst.msk [vmem:[%s4256_s9 + $0x2b0] sm:$0xff] %vm335_vm1, %v2143_v36  ;;  %v2154_v44 = vadd.f32 %v2696_v42, %v4067_v9 }
 0x46b   :  { %v2145_v45 = vpop.f32.mrf.mxu1 }
 0x46c   :  { %2252 = vst.msk [vmem:[%s4256_s9 + $0x2f8] sm:$0xff] %vm335_vm1, %v2154_v44  ;;  %v2146_v37 = vadd.f32 %v2145_v45, %v4067_v9 }
 0x46e   :  { %2246 = vst.msk [vmem:[%s4256_s9 + $0x2c8] sm:$0xff] %vm335_vm1, %v2146_v37 }

</bundles_post_ra>
